<compile_context>
chip_gen: v7x
topology: tpu7x:2x2x1
jax: 0.10.0
libtpu: 0.0.40
codegen_flags: <defaults>
</compile_context>

<pallas_src>
import jax
import jax.numpy as jnp
from jax.experimental import pallas as pl
from jax.experimental.pallas import tpu as pltpu


def _residual_ffn_kernel(x_ref, w1t_ref, b1_ref, w2t_ref, b2_ref, o_ref):
    # x_ref / o_ref: (BN, C, TP)  -- channels on sublanes, pixels on lanes
    # w1t_ref: (HIDDEN, C)   b1_ref: (HIDDEN, 1)
    # w2t_ref: (C, HIDDEN)   b2_ref: (C, 1)
    w1t = w1t_ref[...]
    b1 = b1_ref[...]
    w2t = w2t_ref[...]
    b2 = b2_ref[...]
    bn = x_ref.shape[0]
    for b in range(bn):                       # static unroll; bn is small
        x = x_ref[b]                          # (C, TP)
        # MXU in the weight dtype (bf16-native path when requested), f32 acc.
        h = jnp.dot(w1t, x.astype(w1t.dtype),
                    preferred_element_type=jnp.float32)          # (H, TP)
        # TODO(synk): PyTorch nn.GELU() defaults to exact erf-GELU; the tanh
        # approximation is used here (and in the reference). Switch to
        # approximate=False if the wrapped fn requires the exact variant.
        h = jax.nn.gelu(h + b1, approximate=True)
        y = jnp.dot(w2t, h.astype(w2t.dtype),
                    preferred_element_type=jnp.float32)          # (C, TP)
        y = y + b2
        o_ref[b] = (y + x.astype(jnp.float32)).astype(o_ref.dtype)


def _round_down(x, m):
    return (x // m) * m


def _plan_tiles(n, c, hw, hidden, x_itemsize, w_itemsize, vmem_budget,
                tile_p_target):
    """Pick (bn, tp) for the (bn, C, tp) block under a per-generation VMEM budget."""

    def footprint(bn, tp):
        xo = 2 * (2 * bn * c * tp * x_itemsize)                # x + out, 2-deep
        wts = 2 * (2 * c * hidden + hidden + c) * w_itemsize   # weights/bias
        tmp = bn * (hidden + 2 * c) * tp * 4                   # f32 temporaries
        return xo + wts + tmp

    if hw >= 256:
        # Lane-dense pixel tiling: TP a multiple of 128 (unmasked vst).
        bn = 1
        tp = min(tile_p_target, _round_down(hw, 128))
        tp = max(tp, 128)
        while tp > 128 and footprint(bn, tp) > vmem_budget:
            tp -= 128
        # Keep >= 2 grid steps so both v7x TensorCores get work.
        if n * pl.cdiv(hw, tp) < 2:
            tp = max(128, _round_down(pl.cdiv(hw, 2) + 127, 128))
    else:
        # Small images: pack several batch elements per step.  tp == hw equals
        # the full last dim, so the (8,128) block rule is still satisfied.
        tp = hw
        bn = max(1, min(n, tile_p_target // max(hw, 1)))
        if n >= 2:
            bn = min(bn, pl.cdiv(n, 2))      # keep >= 2 grid steps
        while bn > 1 and footprint(bn, tp) > vmem_budget:
            bn -= 1
    return bn, tp


def residual_add_ffn(x_nchw, w1, b1, w2, b2, *, tile_p=1024, mxu_dtype=None):
    """out = fn(x) + x, fn = pointwise MLP over channels. x is NCHW."""
    n, c, h, w = x_nchw.shape
    hidden = w1.shape[1]
    hw = h * w

    # (N, C, H, W) -> (N, C, HW) is a free reshape (no data movement).
    x3 = x_nchw.reshape(n, c, hw)

    # MXU operand dtype: optional bf16 operands (f32 accumulation) per review.
    w_dtype = jnp.dtype(mxu_dtype) if mxu_dtype is not None else jnp.dtype(
        x_nchw.dtype)

    # Tiny one-time weight transposes so the kernel contracts over C with no
    # in-kernel transpose; biases kept in f32 for the epilogue adds.
    w1t = jnp.transpose(w1).astype(w_dtype)            # (HIDDEN, C)
    w2t = jnp.transpose(w2).astype(w_dtype)            # (C, HIDDEN)
    b1c = b1.reshape(hidden, 1).astype(jnp.float32)
    b2c = b2.reshape(c, 1).astype(jnp.float32)

    # Per-generation VMEM budget (v7x: 64 MiB/TC, v5e/v6e: 128 MiB physical).
    try:
        vmem_cap = int(getattr(pltpu.get_tpu_info(), "vmem_capacity_bytes",
                               64 * 1024 * 1024))
    except Exception:
        vmem_cap = 64 * 1024 * 1024          # conservative (v7x per-TC)
    vmem_budget = min(int(vmem_cap * 3 // 4), 96 * 1024 * 1024)

    x_itemsize = jnp.dtype(x_nchw.dtype).itemsize
    w_itemsize = jnp.dtype(w_dtype).itemsize
    bn, tp = _plan_tiles(n, c, hw, hidden, x_itemsize, w_itemsize,
                         vmem_budget, tile_p)
    grid = (pl.cdiv(n, bn), pl.cdiv(hw, tp))

    pixels = n * hw
    cost = pl.CostEstimate(
        flops=4 * pixels * c * hidden,                     # two matmuls
        transcendentals=pixels * hidden,                   # GELU
        bytes_accessed=(2 * pixels * c * x_itemsize        # x in, out
                        + 2 * c * hidden * w_itemsize + (hidden + c) * 4),
    )
    compiler_params = pltpu.CompilerParams(
        dimension_semantics=("parallel", "parallel"),
        vmem_limit_bytes=int(vmem_budget),
    )

    def make_call(single_buffer_weights):
        wkw = ({"pipeline_mode": pl.Buffered(1)}
               if single_buffer_weights else {})
        in_specs = [
            pl.BlockSpec((bn, c, tp), lambda i, j: (i, 0, j)),        # x tile
            pl.BlockSpec((hidden, c), lambda i, j: (0, 0), **wkw),    # W1^T
            pl.BlockSpec((hidden, 1), lambda i, j: (0, 0), **wkw),    # b1
            pl.BlockSpec((c, hidden), lambda i, j: (0, 0), **wkw),    # W2^T
            pl.BlockSpec((c, 1), lambda i, j: (0, 0), **wkw),         # b2
        ]
        return pl.pallas_call(
            _residual_ffn_kernel,
            out_shape=jax.ShapeDtypeStruct((n, c, hw), x_nchw.dtype),
            grid_spec=pltpu.PrefetchScalarGridSpec(
                num_scalar_prefetch=0,
                grid=grid,
                in_specs=in_specs,
                out_specs=pl.BlockSpec((bn, c, tp), lambda i, j: (i, 0, j)),
            ),
            compiler_params=compiler_params,
            cost_estimate=cost,
        )

    try:
        out3 = make_call(True)(x3, w1t, b1c, w2t, b2c)
    except Exception:
        # Installed jax rejects single-buffered constant operands here; fall
        # back to default double buffering (correct, slightly more VMEM).
        out3 = make_call(False)(x3, w1t, b1c, w2t, b2c)

    # (N, C, HW) -> (N, C, H, W) -- free reshape.
    return out3.reshape(n, c, h, w)


def _reference(x_nchw, w1, b1, w2, b2):
    n, c, h, w = x_nchw.shape
    xf = x_nchw.reshape(n, c, h * w).astype(jnp.float32)          # (N, C, P)
    hdd = jax.nn.gelu(
        jnp.einsum("hc,ncp->nhp", jnp.transpose(w1).astype(jnp.float32), xf)
        + b1.astype(jnp.float32)[None, :, None],
        approximate=True)
    y = (jnp.einsum("ch,nhp->ncp", jnp.transpose(w2).astype(jnp.float32), hdd)
         + b2.astype(jnp.float32)[None, :, None])
    out = y + xf
    return out.reshape(n, c, h, w).astype(x_nchw.dtype)


def _run_case(key, n, c, h, w, hidden, *, tile_p=1024, mxu_dtype=None,
              atol=1e-4, rtol=1e-4):
    k_x, k_w1, k_b1, k_w2, k_b2 = jax.random.split(key, 5)
    x = jax.random.normal(k_x, (n, c, h, w), dtype=jnp.float32)
    w1 = jax.random.normal(k_w1, (c, hidden), dtype=jnp.float32) * 0.05
    b1 = jax.random.normal(k_b1, (hidden,), dtype=jnp.float32) * 0.01
    w2 = jax.random.normal(k_w2, (hidden, c), dtype=jnp.float32) * 0.05
    b2 = jax.random.normal(k_b2, (c,), dtype=jnp.float32) * 0.01

    out = residual_add_ffn(x, w1, b1, w2, b2, tile_p=tile_p,
                           mxu_dtype=mxu_dtype)
    out = jax.block_until_ready(out)

    ref = _reference(x, w1, b1, w2, b2)
    assert out.shape == x.shape and out.dtype == x.dtype
    err = jnp.max(jnp.abs(out - ref))
    assert jnp.allclose(out, ref, atol=atol, rtol=rtol), f"max abs err {err}"


if __name__ == "__main__":
    key = jax.random.PRNGKey(0)
    k0, k1, k2, k3 = jax.random.split(key, 4)

    # Main case: batch=2, channels=32, 16x16 spatial, hidden=64.
    # HW=256 -> lane-dense pixel tiling (TP=256), grid (2, 1).
    _run_case(k0, n=2, c=32, h=16, w=16, hidden=64)

    # Small-HW case: HW=64 < 256 -> batch packing (bn=2), grid (2, 1);
    # exercises the static per-image loop inside the kernel.
    _run_case(k1, n=4, c=16, h=8, w=8, hidden=32)

    # Ragged pixel case: HW=1280 with TP=1024 -> cdiv grid with masked partial
    # last block, and >= 2 pixel steps for a single image (v7x megacore).
    _run_case(k2, n=1, c=32, h=32, w=40, hidden=64)

    # bf16-MXU variant (f32 accumulation): looser tolerance reflects the
    # accuracy trade-off of the review's bf16 suggestion.
    _run_case(k3, n=2, c=32, h=16, w=16, hidden=64,
              mxu_dtype=jnp.bfloat16, atol=5e-2, rtol=5e-2)

    print("KERNEL_OK")
</pallas_src>

<mosaic_0001>
module attributes {stable_mosaic.version = 11 : i64} {
  func.func @_residual_ffn_kernel(%arg0: i32, %arg1: i32, %arg2: memref<1x32x256xf32, #tpu.memory_space<vmem>>, %arg3: memref<64x32xf32, #tpu.memory_space<vmem>>, %arg4: memref<64x1xf32, #tpu.memory_space<vmem>>, %arg5: memref<32x64xf32, #tpu.memory_space<vmem>>, %arg6: memref<32x1xf32, #tpu.memory_space<vmem>>, %arg7: memref<1x32x256xf32, #tpu.memory_space<vmem>>) attributes {dimension_semantics = [#tpu.dimension_semantics<parallel>, #tpu.dimension_semantics<parallel>], iteration_bounds = array<i64: 2, 1>, scalar_prefetch = 0 : i64, scratch_operands = 0 : i64, tpu.core_type = #tpu.core_type<tc>, window_params = [{transform_indices = @transform_0, window_bounds = array<i64: 1, 32, 256>}, {pipeline_mode = #tpu.pipeline_mode<synchronous>, transform_indices = @transform_1, window_bounds = array<i64: 64, 32>}, {pipeline_mode = #tpu.pipeline_mode<synchronous>, transform_indices = @transform_2, window_bounds = array<i64: 64, 1>}, {pipeline_mode = #tpu.pipeline_mode<synchronous>, transform_indices = @transform_3, window_bounds = array<i64: 32, 64>}, {pipeline_mode = #tpu.pipeline_mode<synchronous>, transform_indices = @transform_4, window_bounds = array<i64: 32, 1>}, {transform_indices = @transform_5, window_bounds = array<i64: 1, 32, 256>}]} {
    %c0 = arith.constant 0 : index
    %c0_0 = arith.constant 0 : index
    %0 = vector.load %arg3[%c0, %c0_0] : memref<64x32xf32, #tpu.memory_space<vmem>>, vector<64x32xf32>
    %c0_1 = arith.constant 0 : index
    %c0_2 = arith.constant 0 : index
    %1 = vector.load %arg4[%c0_1, %c0_2] : memref<64x1xf32, #tpu.memory_space<vmem>>, vector<64x1xf32>
    %c0_3 = arith.constant 0 : index
    %c0_4 = arith.constant 0 : index
    %2 = vector.load %arg5[%c0_3, %c0_4] : memref<32x64xf32, #tpu.memory_space<vmem>>, vector<32x64xf32>
    %c0_5 = arith.constant 0 : index
    %c0_6 = arith.constant 0 : index
    %3 = vector.load %arg6[%c0_5, %c0_6] : memref<32x1xf32, #tpu.memory_space<vmem>>, vector<32x1xf32>
    %c0_7 = arith.constant 0 : index
    %c0_8 = arith.constant 0 : index
    %c0_9 = arith.constant 0 : index
    %4 = vector.load %arg2[%c0_7, %c0_8, %c0_9] : memref<1x32x256xf32, #tpu.memory_space<vmem>>, vector<1x32x256xf32>
    %5 = vector.shape_cast %4 : vector<1x32x256xf32> to vector<32x256xf32>
    %cst = arith.constant dense<0.000000e+00> : vector<64x256xf32>
    %6 = tpu.matmul %0, %5, %cst {dimension_numbers = #tpu.dot_dimension_numbers<[1], [0], [0], [1], [0, 0, 1, 1], [], []>} : vector<64x32xf32>, vector<32x256xf32>, vector<64x256xf32> -> vector<64x256xf32>
    %7 = vector.broadcast %1 : vector<64x1xf32> to vector<64x256xf32>
    %8 = arith.addf %6, %7 : vector<64x256xf32>
    %9 = arith.mulf %8, %8 : vector<64x256xf32>
    %10 = arith.mulf %8, %9 : vector<64x256xf32>
    %cst_10 = arith.constant 4.471500e-02 : f32
    %11 = vector.broadcast %cst_10 : f32 to vector<64x256xf32>
    %12 = arith.mulf %11, %10 : vector<64x256xf32>
    %13 = arith.addf %8, %12 : vector<64x256xf32>
    %cst_11 = arith.constant 0.797884583 : f32
    %14 = vector.broadcast %cst_11 : f32 to vector<64x256xf32>
    %15 = arith.mulf %14, %13 : vector<64x256xf32>
    %16 = math.tanh %15 : vector<64x256xf32>
    %cst_12 = arith.constant 1.000000e+00 : f32
    %17 = vector.broadcast %cst_12 : f32 to vector<64x256xf32>
    %18 = arith.addf %17, %16 : vector<64x256xf32>
    %cst_13 = arith.constant 5.000000e-01 : f32
    %19 = vector.broadcast %cst_13 : f32 to vector<64x256xf32>
    %20 = arith.mulf %19, %18 : vector<64x256xf32>
    %21 = arith.mulf %8, %20 : vector<64x256xf32>
    %cst_14 = arith.constant dense<0.000000e+00> : vector<32x256xf32>
    %22 = tpu.matmul %2, %21, %cst_14 {dimension_numbers = #tpu.dot_dimension_numbers<[1], [0], [0], [1], [0, 0, 1, 1], [], []>} : vector<32x64xf32>, vector<64x256xf32>, vector<32x256xf32> -> vector<32x256xf32>
    %23 = vector.broadcast %3 : vector<32x1xf32> to vector<32x256xf32>
    %24 = arith.addf %22, %23 : vector<32x256xf32>
    %25 = arith.addf %24, %5 : vector<32x256xf32>
    %c0_15 = arith.constant 0 : index
    %c0_16 = arith.constant 0 : index
    %c0_17 = arith.constant 0 : index
    %26 = vector.load %arg7[%c0_15, %c0_16, %c0_17] : memref<1x32x256xf32, #tpu.memory_space<vmem>>, vector<1x32x256xf32>
    %27 = vector.shape_cast %26 : vector<1x32x256xf32> to vector<32x256xf32>
    %28 = vector.shape_cast %25 : vector<32x256xf32> to vector<1x32x256xf32>
    tpu.vector_store %arg7[%c0_15, %c0_16, %c0_17], %28 {strides = array<i32>} : memref<1x32x256xf32, #tpu.memory_space<vmem>>, vector<1x32x256xf32>,
    return
  }
  func.func @transform_0(%arg0: i32, %arg1: i32) -> (i32, i32, i32) {
    %c0_i32 = arith.constant 0 : i32
    %c0_i32_0 = arith.constant 0 : i32
    return %arg0, %c0_i32, %arg1 : i32, i32, i32
  }
  func.func @transform_1(%arg0: i32, %arg1: i32) -> (i32, i32) {
    %c0_i32 = arith.constant 0 : i32
    %c0_i32_0 = arith.constant 0 : i32
    %c0_i32_1 = arith.constant 0 : i32
    return %c0_i32, %c0_i32_0 : i32, i32
  }
  func.func @transform_2(%arg0: i32, %arg1: i32) -> (i32, i32) {
    %c0_i32 = arith.constant 0 : i32
    %c0_i32_0 = arith.constant 0 : i32
    %c0_i32_1 = arith.constant 0 : i32
    return %c0_i32, %c0_i32_0 : i32, i32
  }
  func.func @transform_3(%arg0: i32, %arg1: i32) -> (i32, i32) {
    %c0_i32 = arith.constant 0 : i32
    %c0_i32_0 = arith.constant 0 : i32
    %c0_i32_1 = arith.constant 0 : i32
    return %c0_i32, %c0_i32_0 : i32, i32
  }
  func.func @transform_4(%arg0: i32, %arg1: i32) -> (i32, i32) {
    %c0_i32 = arith.constant 0 : i32
    %c0_i32_0 = arith.constant 0 : i32
    %c0_i32_1 = arith.constant 0 : i32
    return %c0_i32, %c0_i32_0 : i32, i32
  }
  func.func @transform_5(%arg0: i32, %arg1: i32) -> (i32, i32, i32) {
    %c0_i32 = arith.constant 0 : i32
    %c0_i32_0 = arith.constant 0 : i32
    return %arg0, %c0_i32, %arg1 : i32, i32, i32
  }
}

module attributes {stable_mosaic.version = 11 : i64} {
  func.func @_residual_ffn_kernel(%arg0: i32, %arg1: i32, %arg2: memref<1x32x256xf32, #tpu.memory_space<vmem>>, %arg3: memref<64x32xf32, #tpu.memory_space<vmem>>, %arg4: memref<64x1xf32, #tpu.memory_space<vmem>>, %arg5: memref<32x64xf32, #tpu.memory_space<vmem>>, %arg6: memref<32x1xf32, #tpu.memory_space<vmem>>, %arg7: memref<1x32x256xf32, #tpu.memory_space<vmem>>) attributes {dimension_semantics = [#tpu.dimension_semantics<parallel>, #tpu.dimension_semantics<parallel>], iteration_bounds = array<i64: 2, 1>, scalar_prefetch = 0 : i64, scratch_operands = 0 : i64, tpu.core_type = #tpu.core_type<tc>, window_params = [{transform_indices = @transform_0, window_bounds = array<i64: 1, 32, 256>}, {pipeline_mode = #tpu.pipeline_mode<synchronous>, transform_indices = @transform_1, window_bounds = array<i64: 64, 32>}, {pipeline_mode = #tpu.pipeline_mode<synchronous>, transform_indices = @transform_2, window_bounds = array<i64: 64, 1>}, {pipeline_mode = #tpu.pipeline_mode<synchronous>, transform_indices = @transform_3, window_bounds = array<i64: 32, 64>}, {pipeline_mode = #tpu.pipeline_mode<synchronous>, transform_indices = @transform_4, window_bounds = array<i64: 32, 1>}, {transform_indices = @transform_5, window_bounds = array<i64: 1, 32, 256>}]} {
    %c0 = arith.constant 0 : index
    %c0_0 = arith.constant 0 : index
    %0 = vector.load %arg3[%c0, %c0_0] : memref<64x32xf32, #tpu.memory_space<vmem>>, vector<64x32xf32>
    %c0_1 = arith.constant 0 : index
    %c0_2 = arith.constant 0 : index
    %1 = vector.load %arg4[%c0_1, %c0_2] : memref<64x1xf32, #tpu.memory_space<vmem>>, vector<64x1xf32>
    %c0_3 = arith.constant 0 : index
    %c0_4 = arith.constant 0 : index
    %2 = vector.load %arg5[%c0_3, %c0_4] : memref<32x64xf32, #tpu.memory_space<vmem>>, vector<32x64xf32>
    %c0_5 = arith.constant 0 : index
    %c0_6 = arith.constant 0 : index
    %3 = vector.load %arg6[%c0_5, %c0_6] : memref<32x1xf32, #tpu.memory_space<vmem>>, vector<32x1xf32>
    %c0_7 = arith.constant 0 : index
    %c0_8 = arith.constant 0 : index
    %c0_9 = arith.constant 0 : index
    %4 = vector.load %arg2[%c0_7, %c0_8, %c0_9] : memref<1x32x256xf32, #tpu.memory_space<vmem>>, vector<1x32x256xf32>
    %5 = vector.shape_cast %4 : vector<1x32x256xf32> to vector<32x256xf32>
    %cst = arith.constant dense<0.000000e+00> : vector<64x256xf32>
    %6 = tpu.matmul %0, %5, %cst {dimension_numbers = #tpu.dot_dimension_numbers<[1], [0], [0], [1], [0, 0, 1, 1], [], []>} : vector<64x32xf32>, vector<32x256xf32>, vector<64x256xf32> -> vector<64x256xf32>
    %7 = vector.broadcast %1 : vector<64x1xf32> to vector<64x256xf32>
    %8 = arith.addf %6, %7 : vector<64x256xf32>
    %9 = arith.mulf %8, %8 : vector<64x256xf32>
    %10 = arith.mulf %8, %9 : vector<64x256xf32>
    %cst_10 = arith.constant 4.471500e-02 : f32
    %11 = vector.broadcast %cst_10 : f32 to vector<64x256xf32>
    %12 = arith.mulf %11, %10 : vector<64x256xf32>
    %13 = arith.addf %8, %12 : vector<64x256xf32>
    %cst_11 = arith.constant 0.797884583 : f32
    %14 = vector.broadcast %cst_11 : f32 to vector<64x256xf32>
    %15 = arith.mulf %14, %13 : vector<64x256xf32>
    %16 = math.tanh %15 : vector<64x256xf32>
    %cst_12 = arith.constant 1.000000e+00 : f32
    %17 = vector.broadcast %cst_12 : f32 to vector<64x256xf32>
    %18 = arith.addf %17, %16 : vector<64x256xf32>
    %cst_13 = arith.constant 5.000000e-01 : f32
    %19 = vector.broadcast %cst_13 : f32 to vector<64x256xf32>
    %20 = arith.mulf %19, %18 : vector<64x256xf32>
    %21 = arith.mulf %8, %20 : vector<64x256xf32>
    %cst_14 = arith.constant dense<0.000000e+00> : vector<32x256xf32>
    %22 = tpu.matmul %2, %21, %cst_14 {dimension_numbers = #tpu.dot_dimension_numbers<[1], [0], [0], [1], [0, 0, 1, 1], [], []>} : vector<32x64xf32>, vector<64x256xf32>, vector<32x256xf32> -> vector<32x256xf32>
    %23 = vector.broadcast %3 : vector<32x1xf32> to vector<32x256xf32>
    %24 = arith.addf %22, %23 : vector<32x256xf32>
    %25 = arith.addf %24, %5 : vector<32x256xf32>
    %c0_15 = arith.constant 0 : index
    %c0_16 = arith.constant 0 : index
    %c0_17 = arith.constant 0 : index
    %26 = vector.load %arg7[%c0_15, %c0_16, %c0_17] : memref<1x32x256xf32, #tpu.memory_space<vmem>>, vector<1x32x256xf32>
    %27 = vector.shape_cast %26 : vector<1x32x256xf32> to vector<32x256xf32>
    %28 = vector.shape_cast %25 : vector<32x256xf32> to vector<1x32x256xf32>
    tpu.vector_store %arg7[%c0_15, %c0_16, %c0_17], %28 {strides = array<i32>} : memref<1x32x256xf32, #tpu.memory_space<vmem>>, vector<1x32x256xf32>,
    return
  }
  func.func @transform_0(%arg0: i32, %arg1: i32) -> (i32, i32, i32) {
    %c0_i32 = arith.constant 0 : i32
    %c0_i32_0 = arith.constant 0 : i32
    return %arg0, %c0_i32, %arg1 : i32, i32, i32
  }
  func.func @transform_1(%arg0: i32, %arg1: i32) -> (i32, i32) {
    %c0_i32 = arith.constant 0 : i32
    %c0_i32_0 = arith.constant 0 : i32
    %c0_i32_1 = arith.constant 0 : i32
    return %c0_i32, %c0_i32_0 : i32, i32
  }
  func.func @transform_2(%arg0: i32, %arg1: i32) -> (i32, i32) {
    %c0_i32 = arith.constant 0 : i32
    %c0_i32_0 = arith.constant 0 : i32
    %c0_i32_1 = arith.constant 0 : i32
    return %c0_i32, %c0_i32_0 : i32, i32
  }
  func.func @transform_3(%arg0: i32, %arg1: i32) -> (i32, i32) {
    %c0_i32 = arith.constant 0 : i32
    %c0_i32_0 = arith.constant 0 : i32
    %c0_i32_1 = arith.constant 0 : i32
    return %c0_i32, %c0_i32_0 : i32, i32
  }
  func.func @transform_4(%arg0: i32, %arg1: i32) -> (i32, i32) {
    %c0_i32 = arith.constant 0 : i32
    %c0_i32_0 = arith.constant 0 : i32
    %c0_i32_1 = arith.constant 0 : i32
    return %c0_i32, %c0_i32_0 : i32, i32
  }
  func.func @transform_5(%arg0: i32, %arg1: i32) -> (i32, i32, i32) {
    %c0_i32 = arith.constant 0 : i32
    %c0_i32_0 = arith.constant 0 : i32
    return %arg0, %c0_i32, %arg1 : i32, i32, i32
  }
}

</mosaic_0001>

<bundles_post_ra>
// kernel: tpu_custom_call.1
= control target key start
LH: loop header
LB: loop body
LE: loop exit
PB: predicated region body
PF: predicated region fallthrough
CT: control target
= control target key end

     0   :  { %10 = vsyncpa [#allocation3], 0  ;;  %s1466_s0 = inlined_call_operand.vmem [shape: f32[2,32,256], index: 0, kind: input, shape index: {}]   ;;  %s1467_s1 = inlined_call_operand.vmem [shape: f32[64,32], index: 1, kind: input, shape index: {}]   ;;  %s1468_s2 = inlined_call_operand.vmem [shape: f32[64,1], index: 2, kind: input, shape index: {}]   ;;  %s1469_s3 = inlined_call_operand.vmem [shape: f32[32,64], index: 3, kind: input, shape index: {}]   ;;  %s1470_s4 = inlined_call_operand.vmem [shape: f32[32,1], index: 4, kind: input, shape index: {}]   ;;  %s1471_s5 = inlined_call_operand.hbm [shape: f32[2,32,256], index: 5, kind: output, shape index: {}]  }
   0x1   :  { %12 = vsyncpa [#allocation3 + $0x1], 0  ;;  %s1100_s18 = smov 0   ;;  %s1102_s19 = smov 0  }
   0x2   :  { %s1104_s20 = smov 0   ;;  %s1106_s21 = smov 0  }
   0x3   :  { %s1108_s22 = smov 0   ;;  %s1110_s23 = smov 0  }
   0x4 LB: > { %s841_s24 = sadd.s32 4294967295, %s1063_s23   ;;  %s842_s25 = sadd.s32 4294967294, %s1063_s23   ;;  %s1063_s23 = sphi %s1110_s23, %s18_s23   ;;  %s1059_s22 = sphi %s1108_s22, %s1478_s22   ;;  %s1055_s21 = sphi %s1106_s21, %s1477_s21   ;;  %s1051_s20 = sphi %s1104_s20, %s1476_s20   ;;  %s1047_s19 = sphi %s1102_s19, %s1475_s19   ;;  %s1043_s18 = sphi %s1100_s18, %s1474_s18  }
   0x5   : > { %s30_s26 = sadd.s32 1, %s1059_s22  ;;  %s151_s27 = sadd.s32 1, %s1051_s20 }
   0x6   : > { %p32_p0 = scmp.ge.s32.totalorder %s30_s26, 2  ;;  %p161_p1 = scmp.ne.s32.totalorder %s1051_s20, %s1047_s19 }
   0x7   : > { %p162_p2 = scmp.eq.s32.totalorder %s841_s24, 1  ;;  %p167_p3 = scmp.ne.s32.totalorder %s1047_s19, %s1043_s18 }
   0x8   : > { %s1480_s26 = smov (%p32_p0, %s30_s26), 0  ;;  %p168_p5 = scmp.eq.s32.totalorder %s842_s25, 1 }
   0x9   : > { %p1140_p4 = por %p162_p2, %p161_p1  ;;  %s146_s29 = ssub.s32 %s1059_s22, %s1480_s26 }
   0xa   : > { %p845_p6 = scmp.ge.s32.totalorder %s1063_s23, 1  ;;  %p149_p7 = scmp.eq.s32.totalorder %s146_s29, 0 }
   0xb   : > { %p1147_p8 = por %p168_p5, %p167_p3  ;;  %p211_p9 = scmp.lt.s32.totalorder %s1063_s23, 3 }
   0xc   : > { %s1153_s6 = scalar_select %p149_p7, %s1051_s20, %s151_s27  }
   0xd   : > { %p212_p10 = pnand %p845_p6, %p211_p9 }
   0xe   : > { %p244_p11 = scmp.lt.s32.totalorder (!%p212_p10), %s1055_s21, 1  ;;  %v1065_v0 = vmov (!%p212_p10), 0.0   ;;  %v1066_v1 = vmov (!%p212_p10), 0   ;;  %v262_v2 = vld [vmem:[%s1468_s2] sm:$0xff] (!%p212_p10)  ;;  %v264_v3 = vld [vmem:[%s1468_s2 + $0x10] sm:$0xff] (!%p212_p10)  ;;  %v263_v4 = vld [vmem:[%s1468_s2 + $0x8] sm:$0xff] (!%p212_p10) }
   0xf   : > { %215 = sbr.rel (%p212_p10) target bundleno = 557 (0x22d), region = 40  ;;  %415 = vmatprep.mubr.f32.mxu0 (!%p212_p10), %v1065_v0  ;;  %705 = vmatprep.mubr.f32.mxu1 (!%p212_p10), %v1065_v0  ;;  %v265_v5 = vld [vmem:[%s1468_s2 + $0x18] sm:$0xff] (!%p212_p10)  ;;  %v266_v17 = vld [vmem:[%s1468_s2 + $0x20] sm:$0xff] (!%p212_p10)  ;;  %v267_v18 = vld [vmem:[%s1468_s2 + $0x28] sm:$0xff] (!%p212_p10)  ;;  %vm326_vm0 = vcmask (!%p212_p10), 261120   ;;  %vm628_vm1 = vcmask (!%p212_p10), 523264  }
  0x10   : > { %951 = vset.pattern.permute.xlu0 (!%p212_p10), %v1066_v1  ;;  %952 = vset.pattern.permute.xlu1 (!%p212_p10), %v1066_v1  ;;  %v268_v20 = vld [vmem:[%s1468_s2 + $0x30] sm:$0xff] (!%p212_p10)  ;;  %v269_v21 = vld [vmem:[%s1468_s2 + $0x38] sm:$0xff] (!%p212_p10)  ;;  %v254_v22 = vld [vmem:[%s1467_s1] sm:$0xff] (!%p212_p10)  ;;  %s240_s15 = sand.u32 (!%p212_p10), 1, %s1047_s19   ;;  %s867_s24 = sshll.u32 (!%p212_p10), %s1055_s21, 10 }
  0x11   : > { %288 = vperm.xlu0 (!%p212_p10), %951, %v262_v2   ;;  %298 = vperm.xlu1 (!%p212_p10), %952, %v264_v3   ;;  %v274_v23 = vld [vmem:[%s1470_s4] sm:$0xff] (!%p212_p10)  ;;  %v275_v24 = vld [vmem:[%s1470_s4 + $0x8] sm:$0xff] (!%p212_p10)  ;;  %v276_v26 = vld [vmem:[%s1470_s4 + $0x10] sm:$0xff] (!%p212_p10)  ;;  %s846_s16 = sshll.u32 (!%p212_p10), %s240_s15, 6  ;;  %s1067_s9 = smov (!%p212_p10), [#allocation2]  }
  0x12   : > { %v255_v25 = vld [vmem:[%s1467_s1 + $0x8] sm:$0xff] (!%p212_p10)  ;;  %v277_v27 = vld [vmem:[%s1470_s4 + $0x18] sm:$0xff] (!%p212_p10)  ;;  %v256_v28 = vld [vmem:[%s1467_s1 + $0x10] sm:$0xff] (!%p212_p10)  ;;  %s989_s10 = sshll.u32 (!%p212_p10), %s1067_s9, 4  ;;  %s990_s10 = int_to_ptr.vmem [resolvable:$false] %s989_s10 }
  0x13   : > { %v257_v29 = vld [vmem:[%s1467_s1 + $0x18] sm:$0xff] (!%p212_p10)  ;;  %v258_v30 = vld [vmem:[%s1467_s1 + $0x20] sm:$0xff] (!%p212_p10)  ;;  %v259_v31 = vld [vmem:[%s1467_s1 + $0x28] sm:$0xff] (!%p212_p10)  ;;  %s991_s11 = scalar_lea.vmem (!%p212_p10), %s990_s10, 2048 }
  0x14   : > { %v260_v32 = vld [vmem:[%s1467_s1 + $0x30] sm:$0xff] (!%p212_p10)  ;;  %v261_v33 = vld [vmem:[%s1467_s1 + $0x38] sm:$0xff] (!%p212_p10) }
  0x15   : > { %293 = vperm.xlu0 (!%p212_p10), %951, %v263_v4   ;;  %303 = vperm.xlu1 (!%p212_p10), %952, %v265_v5  }
  0x16   : > { %s245_s7 = scalar_select %p244_p11, %s1055_s21, 1 }
  0x17   : > { %s1420_s21 = scalar_lea.sflag [#allocation3], %s240_s15 }
  0x18   : > { %s866_s12 = sshll.u32 %s245_s7, 6  ;;  %s1411_s7 = scalar_lea.hbm %s1471_s5, %s867_s24 }
  0x19   : > { %s251_s17 = scalar_lea.vmem %s1466_s0, %s866_s12  ;;  %308 = vperm.xlu0 %951, %v266_v17   ;;  %313 = vperm.xlu1 %952, %v267_v18  }
  0x1a   : > { %v1174_v6 = vld [vmem:[%s251_s17 + $0x8] sm:$0xff]  ;;  %v1176_v7 = vld [vmem:[%s251_s17 + $0x18] sm:$0xff]  ;;  %v1178_v8 = vld [vmem:[%s251_s17] sm:$0xff] }
  0x1b   : > { %v868_v9 = vpack.c.bf16 %v1176_v7, %v1174_v6  ;;  %v1182_v10 = vld [vmem:[%s251_s17 + $0x10] sm:$0xff]  ;;  %v1184_v11 = vld [vmem:[%s251_s17 + $0x28] sm:$0xff]  ;;  %v1186_v12 = vld [vmem:[%s251_s17 + $0x38] sm:$0xff] }
  0x1c   : > { %v870_v13 = vpack.c.bf16 %v1182_v10, %v1178_v8  ;;  %v872_v14 = vpack.c.bf16 %v1186_v12, %v1184_v11  ;;  %v1192_v15 = vld [vmem:[%s251_s17 + $0x20] sm:$0xff]  ;;  %v1194_v16 = vld [vmem:[%s251_s17 + $0x30] sm:$0xff]  ;;  %s1393_s17 = scalar_lea.vmem [#allocation2], %s846_s16 }
  0x1d   : > { %869 = vmatprep.subr.bf16.mxu0 %v868_v9  ;;  %v874_v19 = vpack.c.bf16 %v1194_v16, %v1192_v15  ;;  %318 = vperm.xlu0 %951, %v268_v20   ;;  %s762_s25 = sshll.u32 %s1393_s17, 4  ;;  %s1413_s25 = int_to_ptr.vmem [resolvable:$true] %s762_s25 }
  0x1e   : > { %871 = vmatpush1.bf16.msra.mxu0 %v870_v13  ;;  %323 = vperm.xlu1 %952, %v269_v21   ;;  %s985_s8 = scalar_lea.vmem %s1413_s25, 1024  ;;  %p992_p1 = scmp.lt.s32.totalorder %s1413_s25, %s990_s10 }
  0x1f   : > { %873 = vmatprep.subr.bf16.mxu0 %v872_v14  ;;  %p986_p12 = scmp.ne.s32.totalorder %s1413_s25, %s985_s8  ;;  %p993_p2 = scmp.lt.s32.totalorder %s991_s11, %s985_s8 }
  0x21   : > { %610 = vperm.xlu0 %951, %v274_v23   ;;  %p987_p13 = pnand %p986_p12, %p1140_p4  ;;  %p994_p3 = por %p993_p2, %p992_p1 }
  0x22   : > { %875 = vmatpush1.bf16.msra.mxu0 %v874_v19  ;;  %615 = vperm.xlu1 %952, %v275_v24  }
  0x23   : > { %p988_p0 = pneg %p987_p13 }
  0x25   : > { %849 = vmatmul.mubr.msk.f32.vlgmr.msra.gmra.mrb[0].mxu0 %vm326_vm0, %v254_v22  ;;  %620 = vperm.xlu0 %951, %v276_v26   ;;  %p995_p5 = pnand %p994_p3, %p988_p0 }
  0x26   : > { %421 = vmatprep.mubr.f32.mxu0 %v1065_v0  ;;  %625 = vperm.xlu1 %952, %v277_v27  }
  0x29   : > { %850 = vmatmul.mubr.msk.f32.gmra.mrb[2].mxu0 %vm326_vm0, %v255_v25 }
  0x2a   : > { %427 = vmatprep.mubr.f32.mxu0 %v1065_v0 }
  0x2d   : > { %851 = vmatmul.mubr.msk.f32.gmra.mrb[4].mxu0 %vm326_vm0, %v256_v28 }
  0x2e   : > { %433 = vmatprep.mubr.f32.mxu0 %v1065_v0 }
  0x31   : > { %852 = vmatmul.mubr.msk.f32.gmra.mrb[6].mxu0 %vm326_vm0, %v257_v29 }
  0x32   : > { %439 = vmatprep.mubr.f32.mxu0 %v1065_v0 }
  0x35   : > { %853 = vmatmul.mubr.msk.f32.gmra.mrb[8].mxu0 %vm326_vm0, %v258_v30 }
  0x36   : > { %445 = vmatprep.mubr.f32.mxu0 %v1065_v0 }
  0x39   : > { %854 = vmatmul.mubr.msk.f32.gmra.mrb[10].mxu0 %vm326_vm0, %v259_v31 }
  0x3a   : > { %451 = vmatprep.mubr.f32.mxu0 %v1065_v0 }
  0x3d   : > { %855 = vmatmul.mubr.msk.f32.gmra.mrb[12].mxu0 %vm326_vm0, %v260_v32 }
  0x3e   : > { %457 = vmatprep.mubr.f32.mxu0 %v1065_v0 }
  0x41   : > { %856 = vmatmul.mubr.msk.f32.gmra.mrb[14].mxu0 %vm326_vm0, %v261_v33 }
  0x90   : > { %v289_v34 = vpop.permute.xlu0 %288  ;;  %v299_v46 = vpop.permute.xlu1 %298 }
  0x94   : > { %v294_v40 = vpop.permute.xlu0 %293  ;;  %v304_v1 = vpop.permute.xlu1 %303 }
  0x98   : > { %v309_v24 = vpop.permute.xlu0 %308 }
  0xf8   : > { %v417_v35 = vpop.f32.mrb[0].mxu0 }
  0xf9   : > { %v1261_v36 = vadd.f32 %v417_v35, %v289_v34  ;;  %v419_v37 = vpop.f32.mrb[1].mxu0 }
  0xfa   : > { %v1263_v38 = vadd.f32 %v419_v37, %v289_v34 }
  0xfb   : > { %v464_v39 = vmul.f32 %v1261_v36, %v1261_v36 }
  0xfc   : > { %v465_v41 = vmul.f32 %v1263_v38, %v1263_v38  ;;  %v423_v42 = vpop.f32.mrb[2].mxu0 }
  0xfd   : > { %v480_v43 = vmul.f32 %v464_v39, %v1261_v36  ;;  %v1270_v44 = vadd.f32 %v423_v42, %v294_v40  ;;  %v425_v45 = vpop.f32.mrb[3].mxu0 }
  0xfe   : > { %v481_v47 = vmul.f32 %v465_v41, %v1263_v38  ;;  %v1273_v48 = vadd.f32 %v425_v45, %v294_v40  ;;  %v314_v41 = vpop.permute.xlu1 %313 }
  0xff   : > { %v496_v49 = vmul.f32 0.044715, %v480_v43  ;;  %v466_v50 = vmul.f32 %v1270_v44, %v1270_v44 }
 0x100   : > { %v497_v51 = vmul.f32 0.044715, %v481_v47  ;;  %v467_v52 = vmul.f32 %v1273_v48, %v1273_v48  ;;  %v429_v53 = vpop.f32.mrb[4].mxu0 }
 0x101   : > { %v512_v54 = vadd.f32 %v496_v49, %v1261_v36  ;;  %v482_v55 = vmul.f32 %v466_v50, %v1270_v44  ;;  %v1281_v56 = vadd.f32 %v429_v53, %v299_v46  ;;  %v431_v57 = vpop.f32.mrb[5].mxu0 }
 0x102   : > { %v483_v58 = vmul.f32 %v467_v52, %v1273_v48  ;;  %v1284_v59 = vadd.f32 %v431_v57, %v299_v46  ;;  %v513_v60 = vadd.f32 %v497_v51, %v1263_v38 }
 0x103   : > { %v528_v61 = vmul.f32 0.7978846, %v512_v54  ;;  %v498_v62 = vmul.f32 0.044715, %v482_v55  ;;  %v468_v63 = vmul.f32 %v1281_v56, %v1281_v56 }
 0x104   : > { %v499_v2 = vmul.f32 0.044715, %v483_v58  ;;  %v469_v3 = vmul.f32 %v1284_v59, %v1284_v59  ;;  %v435_v4 = vpop.f32.mrb[6].mxu0  ;;  %v529_v5 = vmul.f32 0.7978846, %v513_v60 }
 0x105   : > { %v514_v9 = vadd.f32 %v498_v62, %v1270_v44  ;;  %v484_v13 = vmul.f32 %v468_v63, %v1281_v56  ;;  %v1293_v14 = vadd.f32 %v435_v4, %v304_v1  ;;  %v437_v17 = vpop.f32.mrb[7].mxu0  ;;  %953 = vtanh.f32 %v528_v61  ;;  %v319_v62 = vpop.permute.xlu0 %318 }
 0x106   : > { %v485_v18 = vmul.f32 %v469_v3, %v1284_v59  ;;  %v1296_v19 = vadd.f32 %v437_v17, %v304_v1  ;;  %v515_v20 = vadd.f32 %v499_v2, %v1273_v48  ;;  %955 = vtanh.f32 %v529_v5 }
 0x107   : > { %v530_v21 = vmul.f32 0.7978846, %v514_v9  ;;  %v500_v22 = vmul.f32 0.044715, %v484_v13  ;;  %v470_v23 = vmul.f32 %v1293_v14, %v1293_v14 }
 0x108   : > { %v501_v25 = vmul.f32 0.044715, %v485_v18  ;;  %v471_v26 = vmul.f32 %v1296_v19, %v1296_v19  ;;  %v441_v27 = vpop.f32.mrb[8].mxu0  ;;  %v531_v28 = vmul.f32 0.7978846, %v515_v20 }
 0x109   : > { %v516_v29 = vadd.f32 %v500_v22, %v1281_v56  ;;  %v486_v30 = vmul.f32 %v470_v23, %v1293_v14  ;;  %v1305_v31 = vadd.f32 %v441_v27, %v309_v24  ;;  %v443_v32 = vpop.f32.mrb[9].mxu0  ;;  %957 = vtanh.f32 %v530_v21 }
 0x10a   : > { %v517_v33 = vadd.f32 %v501_v25, %v1284_v59  ;;  %v487_v34 = vmul.f32 %v471_v26, %v1296_v19  ;;  %v1309_v35 = vadd.f32 %v443_v32, %v309_v24  ;;  %959 = vtanh.f32 %v531_v28  ;;  %v324_v28 = vpop.permute.xlu1 %323 }
 0x10b   : > { %v532_v37 = vmul.f32 0.7978846, %v516_v29  ;;  %v502_v39 = vmul.f32 0.044715, %v486_v30  ;;  %v472_v40 = vmul.f32 %v1305_v31, %v1305_v31 }
 0x10c   : > { %v533_v42 = vmul.f32 0.7978846, %v517_v33  ;;  %v503_v43 = vmul.f32 0.044715, %v487_v34  ;;  %v473_v45 = vmul.f32 %v1309_v35, %v1309_v35  ;;  %v447_v46 = vpop.f32.mrb[10].mxu0 }
 0x10d   : > { %v518_v47 = vadd.f32 %v502_v39, %v1293_v14  ;;  %v488_v49 = vmul.f32 %v472_v40, %v1305_v31  ;;  %v1317_v50 = vadd.f32 %v447_v46, %v314_v41  ;;  %v449_v51 = vpop.f32.mrb[11].mxu0  ;;  %961 = vtanh.f32 %v532_v37 }
 0x10e   : > { %v519_v52 = vadd.f32 %v503_v43, %v1296_v19  ;;  %v489_v53 = vmul.f32 %v473_v45, %v1309_v35  ;;  %v1321_v54 = vadd.f32 %v449_v51, %v314_v41  ;;  %963 = vtanh.f32 %v533_v42 }
 0x10f   : > { %v954_v55 = vpop.eup %953  ;;  %v534_v57 = vmul.f32 0.7978846, %v518_v47  ;;  %v504_v58 = vmul.f32 0.044715, %v488_v49  ;;  %v474_v60 = vmul.f32 %v1317_v50, %v1317_v50 }
 0x110   : > { %v956_v61 = vpop.eup %955  ;;  %v535_v63 = vmul.f32 0.7978846, %v519_v52  ;;  %v505_v1 = vmul.f32 0.044715, %v489_v53  ;;  %v475_v2 = vmul.f32 %v1321_v54, %v1321_v54  ;;  %v453_v3 = vpop.f32.mrb[12].mxu0  ;;  %v560_v4 = vadd.f32 1.0, %v954_v55 }
 0x111   : > { %965 = vtanh.f32 %v534_v57  ;;  %v520_v5 = vadd.f32 %v504_v58, %v1305_v31  ;;  %v490_v9 = vmul.f32 %v474_v60, %v1317_v50  ;;  %v1329_v13 = vadd.f32 %v453_v3, %v319_v62  ;;  %v455_v17 = vpop.f32.mrb[13].mxu0 }
 0x112   : > { %967 = vtanh.f32 %v535_v63  ;;  %v521_v18 = vadd.f32 %v505_v1, %v1309_v35  ;;  %v491_v20 = vmul.f32 %v475_v2, %v1321_v54  ;;  %v1333_v21 = vadd.f32 %v455_v17, %v319_v62 }
 0x113   : > { %v958_v22 = vpop.eup %957  ;;  %v536_v23 = vmul.f32 0.7978846, %v520_v5  ;;  %v506_v24 = vmul.f32 0.044715, %v490_v9  ;;  %v476_v25 = vmul.f32 %v1329_v13, %v1329_v13  ;;  %v561_v26 = vadd.f32 1.0, %v956_v61 }
 0x114   : > { %v960_v27 = vpop.eup %959  ;;  %v537_v29 = vmul.f32 0.7978846, %v521_v18  ;;  %v507_v30 = vmul.f32 0.044715, %v491_v20  ;;  %v477_v32 = vmul.f32 %v1333_v21, %v1333_v21  ;;  %v459_v33 = vpop.f32.mrb[14].mxu0  ;;  %v562_v34 = vadd.f32 1.0, %v958_v22 }
 0x115   : > { %969 = vtanh.f32 %v536_v23  ;;  %v522_v37 = vadd.f32 %v506_v24, %v1317_v50  ;;  %v492_v39 = vmul.f32 %v476_v25, %v1329_v13  ;;  %v1341_v40 = vadd.f32 %v459_v33, %v324_v28  ;;  %v461_v41 = vpop.f32.mrb[15].mxu0 }
 0x116   : > { %971 = vtanh.f32 %v537_v29  ;;  %v523_v42 = vadd.f32 %v507_v30, %v1321_v54  ;;  %v493_v43 = vmul.f32 %v477_v32, %v1333_v21  ;;  %v1345_v45 = vadd.f32 %v461_v41, %v324_v28 }
 0x117   : > { %v538_v46 = vmul.f32 0.7978846, %v522_v37  ;;  %v508_v47 = vmul.f32 0.044715, %v492_v39  ;;  %v478_v49 = vmul.f32 %v1341_v40, %v1341_v40  ;;  %v563_v51 = vadd.f32 1.0, %v960_v27  ;;  %v962_v52 = vpop.eup %961 }
 0x118   : > { %v539_v53 = vmul.f32 0.7978846, %v523_v42  ;;  %v509_v55 = vmul.f32 0.044715, %v493_v43  ;;  %v479_v57 = vmul.f32 %v1345_v45, %v1345_v45  ;;  %v577_v58 = vmul.f32 0.5, %v561_v26  ;;  %v964_v60 = vpop.eup %963 }
 0x119   : > { %973 = vtanh.f32 %v538_v46  ;;  %v524_v61 = vadd.f32 %v508_v47, %v1329_v13  ;;  %v494_v62 = vmul.f32 %v478_v49, %v1341_v40  ;;  %v579_v63 = vmul.f32 0.5, %v563_v51 }
 0x11a   : > { %975 = vtanh.f32 %v539_v53  ;;  %v525_v1 = vadd.f32 %v509_v55, %v1333_v21  ;;  %v495_v2 = vmul.f32 %v479_v57, %v1345_v45  ;;  %v593_v3 = vmul.f32 %v577_v58, %v1263_v38 }
 0x11b   : > { %v966_v5 = vpop.eup %965  ;;  %v540_v9 = vmul.f32 0.7978846, %v524_v61  ;;  %v510_v17 = vmul.f32 0.044715, %v494_v62  ;;  %v595_v18 = vmul.f32 %v579_v63, %v1273_v48  ;;  %v576_v20 = vmul.f32 0.5, %v560_v4 }
 0x11c   : > { %v968_v22 = vpop.eup %967  ;;  %v541_v23 = vmul.f32 0.7978846, %v525_v1  ;;  %v511_v24 = vmul.f32 0.044715, %v495_v2  ;;  %v578_v25 = vmul.f32 0.5, %v562_v34  ;;  %v565_v26 = vadd.f32 1.0, %v964_v60 }
 0x11d   : > { %977 = vtanh.f32 %v540_v9  ;;  %v526_v27 = vadd.f32 %v510_v17, %v1341_v40  ;;  %v876_v28 = vpack.c.bf16 %v595_v18, %v593_v3  ;;  %v592_v29 = vmul.f32 %v576_v20, %v1261_v36 }
 0x11e   : > { %979 = vtanh.f32 %v541_v23  ;;  %v527_v38 = vadd.f32 %v511_v24, %v1345_v45  ;;  %v594_v30 = vmul.f32 %v578_v25, %v1270_v44  ;;  %v567_v32 = vadd.f32 1.0, %v968_v22 }
 0x11f   : > { %v970_v33 = vpop.eup %969  ;;  %v542_v48 = vmul.f32 0.7978846, %v526_v27  ;;  %877 = vmatprep.subr.bf16.mxu1 %v876_v28  ;;  %v581_v4 = vmul.f32 0.5, %v565_v26  ;;  %v564_v37 = vadd.f32 1.0, %v962_v52  ;;  %v566_v39 = vadd.f32 1.0, %v966_v5 }
 0x120   : > { %v972_v34 = vpop.eup %971  ;;  %v543_v41 = vmul.f32 0.7978846, %v527_v38  ;;  %v878_v42 = vpack.c.bf16 %v594_v30, %v592_v29  ;;  %v583_v43 = vmul.f32 0.5, %v567_v32  ;;  %v568_v46 = vadd.f32 1.0, %v970_v33  ;;  %v270_v33 = vld [vmem:[%s1469_s3] sm:$0xff] }
 0x121   : > { %981 = vtanh.f32 %v542_v48  ;;  %v580_v47 = vmul.f32 0.5, %v564_v37  ;;  %v582_v36 = vmul.f32 0.5, %v566_v39  ;;  %v597_v49 = vmul.f32 %v581_v4, %v1284_v59 }
 0x122   : > { %983 = vtanh.f32 %v543_v41  ;;  %879 = vmatpush1.bf16.msra.mxu1 %v878_v42  ;;  %v599_v44 = vmul.f32 %v583_v43, %v1296_v19  ;;  %v569_v51 = vadd.f32 1.0, %v972_v34  ;;  %v584_v61 = vmul.f32 0.5, %v568_v46  ;;  %v616_v41 = vpop.permute.xlu1 %615 }
 0x123   : > { %v974_v53 = vpop.eup %973  ;;  %v596_v55 = vmul.f32 %v580_v47, %v1281_v56  ;;  %v598_v52 = vmul.f32 %v582_v36, %v1293_v14 }
 0x124   : > { %v976_v57 = vpop.eup %975  ;;  %v880_v58 = vpack.c.bf16 %v599_v44, %v597_v49  ;;  %v570_v60 = vadd.f32 1.0, %v974_v53  ;;  %v585_v1 = vmul.f32 0.5, %v569_v51  ;;  %v600_v19 = vmul.f32 %v584_v61, %v1305_v31 }
 0x125   : > { %v882_v62 = vpack.c.bf16 %v598_v52, %v596_v55  ;;  %v571_v63 = vadd.f32 1.0, %v976_v57 }
 0x126   : > { %881 = vmatprep.subr.bf16.mxu1 %v880_v58  ;;  %v586_v2 = vmul.f32 0.5, %v570_v60  ;;  %v601_v14 = vmul.f32 %v585_v1, %v1309_v35  ;;  %v626_v52 = vpop.permute.xlu1 %625 }
 0x127   : > { %v978_v3 = vpop.eup %977  ;;  %883 = vmatpush1.bf16.msra.mxu1 %v882_v62  ;;  %v587_v59 = vmul.f32 0.5, %v571_v63 }
 0x128   : > { %v980_v5 = vpop.eup %979  ;;  %v602_v9 = vmul.f32 %v586_v2, %v1317_v50  ;;  %v572_v56 = vadd.f32 1.0, %v978_v3 }
 0x129   : > { %v603_v17 = vmul.f32 %v587_v59, %v1321_v54  ;;  %v573_v18 = vadd.f32 1.0, %v980_v5 }
 0x12a   : > { %v886_v20 = vpack.c.bf16 %v602_v9, %v600_v19  ;;  %v588_v26 = vmul.f32 0.5, %v572_v56 }
 0x12b   : > { %v982_v22 = vpop.eup %981  ;;  %v884_v23 = vpack.c.bf16 %v603_v17, %v601_v14  ;;  %v589_v28 = vmul.f32 0.5, %v573_v18 }
 0x12c   : > { %v984_v24 = vpop.eup %983  ;;  %v574_v25 = vadd.f32 1.0, %v982_v22  ;;  %v604_v50 = vmul.f32 %v588_v26, %v1329_v13  ;;  %v271_v13 = vld [vmem:[%s1469_s3 + $0x8] sm:$0xff] }
 0x12d   : > { %885 = vmatprep.subr.bf16.mxu1 %v884_v23  ;;  %v575_v27 = vadd.f32 1.0, %v984_v24  ;;  %v605_v35 = vmul.f32 %v589_v28, %v1333_v21  ;;  %v272_v21 = vld [vmem:[%s1469_s3 + $0x10] sm:$0xff] }
 0x12e   : > { %887 = vmatpush1.bf16.msra.mxu1 %v886_v20  ;;  %v590_v29 = vmul.f32 0.5, %v574_v25 }
 0x12f   : > { %v591_v31 = vmul.f32 0.5, %v575_v27 }
 0x130   : > { %v606_v38 = vmul.f32 %v590_v29, %v1341_v40  ;;  %v273_v40 = vld [vmem:[%s1469_s3 + $0x18] sm:$0xff] }
 0x131   : > { %v607_v54 = vmul.f32 %v591_v31, %v1345_v45  ;;  %v611_v45 = vpop.permute.xlu0 %610 }
 0x132   : > { %v890_v30 = vpack.c.bf16 %v606_v38, %v604_v50 }
 0x133   : > { %v888_v32 = vpack.c.bf16 %v607_v54, %v605_v35 }
 0x135   : > { %889 = vmatprep.subr.bf16.mxu1 %v888_v32  ;;  %v621_v36 = vpop.permute.xlu0 %620 }
 0x136   : > { %891 = vmatpush1.bf16.msra.mxu1 %v890_v30 }
 0x139   : > { %857 = vmatmul.mubr.msk.f32.vlgmr.msra.gmra.mrb[0].mxu1 %vm628_vm1, %v270_v33 }
 0x13a   : > { %711 = vmatprep.mubr.f32.mxu1 %v1065_v0 }
 0x13d   : > { %858 = vmatmul.mubr.msk.f32.gmra.mrb[2].mxu1 %vm628_vm1, %v271_v13 }
 0x13e   : > { %717 = vmatprep.mubr.f32.mxu1 %v1065_v0 }
 0x141   : > { %859 = vmatmul.mubr.msk.f32.gmra.mrb[4].mxu1 %vm628_vm1, %v272_v21 }
 0x142   : > { %723 = vmatprep.mubr.f32.mxu1 %v1065_v0 }
 0x145   : > { %860 = vmatmul.mubr.msk.f32.gmra.mrb[6].mxu1 %vm628_vm1, %v273_v40 }
 0x20c   : > { %v707_v48 = vpop.f32.mrb[0].mxu1 }
 0x20d   : > { %v708_v4 = vadd.f32 %v707_v48, %v611_v45  ;;  %v709_v37 = vpop.f32.mrb[1].mxu1 }
 0x20e   : > { %v710_v39 = vadd.f32 %v709_v37, %v611_v45 }
 0x20f   : > { %v730_v34 = vadd.f32 %v708_v4, %v1178_v8 }
 0x210   : > { %v731_v42 = vadd.f32 %v710_v39, %v1174_v6  ;;  %v713_v43 = vpop.f32.mrb[2].mxu1 }
 0x211   : > { %738 = vst [vmem:[%s1393_s17] sm:$0xff] %v730_v34  ;;  %v714_v0 = vadd.f32 %v713_v43, %v616_v41  ;;  %v715_v46 = vpop.f32.mrb[3].mxu1 }
 0x212   : > { %739 = vst [vmem:[%s1393_s17 + $0x8] sm:$0xff] %v731_v42  ;;  %v716_v47 = vadd.f32 %v715_v46, %v616_v41 }
 0x213   : > { %v732_v8 = vadd.f32 %v714_v0, %v1182_v10 }
 0x214   : > { %v733_v6 = vadd.f32 %v716_v47, %v1176_v7  ;;  %v719_v49 = vpop.f32.mrb[4].mxu1 }
 0x215   : > { %740 = vst [vmem:[%s1393_s17 + $0x10] sm:$0xff] %v732_v8  ;;  %v720_v44 = vadd.f32 %v719_v49, %v621_v36  ;;  %v721_v51 = vpop.f32.mrb[5].mxu1 }
 0x216   : > { %741 = vst [vmem:[%s1393_s17 + $0x18] sm:$0xff] %v733_v6  ;;  %v722_v53 = vadd.f32 %v721_v51, %v621_v36 }
 0x217   : > { %v734_v55 = vadd.f32 %v720_v44, %v1192_v15 }
 0x218   : > { %v735_v57 = vadd.f32 %v722_v53, %v1184_v11  ;;  %v725_v58 = vpop.f32.mrb[6].mxu1 }
 0x219   : > { %742 = vst [vmem:[%s1393_s17 + $0x20] sm:$0xff] %v734_v55  ;;  %v726_v7 = vadd.f32 %v725_v58, %v626_v52  ;;  %v727_v10 = vpop.f32.mrb[7].mxu1 }
 0x21a   : > { %743 = vst [vmem:[%s1393_s17 + $0x28] sm:$0xff] %v735_v57  ;;  %v728_v60 = vadd.f32 %v727_v10, %v626_v52 }
 0x21b   : > { %v736_v61 = vadd.f32 %v726_v7, %v1194_v16 }
 0x21c   : > { %v737_v11 = vadd.f32 %v728_v60, %v1186_v12 }
 0x21d   : > { %744 = vst [vmem:[%s1393_s17 + $0x30] sm:$0xff] %v736_v61 }
 0x21e   : > { %745 = vst [vmem:[%s1393_s17 + $0x38] sm:$0xff] %v737_v11 }
 0x21f   : > { %998 = shalt.err (!%p995_p5)
}
 0x220   : > { %s999_s12 = scalar_lea.hbm %s1411_s7, 1024  ;;  %s1003_s15 = scalar_lea.hbm %s1471_s5, 2048 }
 0x221   : > { %p1000_p6 = scmp.ne.s32.totalorder %s1411_s7, %s999_s12  ;;  %p1004_p10 = scmp.lt.u32.totalorder %s1411_s7, %s1471_s5 }
 0x222   : > { %p1005_p11 = scmp.lt.u32.totalorder %s1003_s15, %s999_s12  ;;  %p1007_p13 = scmp.lt.u32.totalorder %s999_s12, %s1411_s7 }
 0x223   : > { %p1001_p7 = pnand %p1000_p6, %p1140_p4 }
 0x224   : > { %p1006_p12 = por %p1005_p11, %p1004_p10 }
 0x225   : > { %p1002_p9 = pneg %p1001_p7 }
 0x226   : > { %p1008_p0 = por %p1007_p13, %p1006_p12 }
 0x228   : > { %p1009_p1 = pnand %p1008_p0, %p1002_p9 }
 0x22a   : > { %1012 = shalt.err (!%p1009_p1)
}
 0x22b   : > { %s1068_s24 = smov 256   ;;  %s1069_s27 = smov 16  }
 0x22c   : > { %892 = dma.vmem_to_hbm [thread:$0]  (%p1140_p4), %s1413_s25, 1024, %s1411_s7, %s1420_s21, %s1068_s24, %s1068_s24, %s1069_s27  }
 0x22d PF: > { %p898_p2 = scmp.ge.s32.totalorder %s1063_s23, 2  ;;  %s777_s29 = sand.u32 1, %s1043_s18  }
 0x22e   : > { %s778_s8 = scalar_lea.sflag [#allocation3], %s777_s29 }
 0x22f   : > { %p895_p3 = pnand %p898_p2, %p1147_p8 }
 0x231   : > { %1038 = dma.done.wait (!%p895_p3), %s778_s8, 1024  }
 0x232   : > { %1040 = vsyncadd (!%p895_p3), %s778_s8, 4294966272  ;;  %s18_s23 = sadd.s32 1, %s1063_s23   ;;  %s1474_s18 = smov %s1047_s19 }
 0x233   : > { %p15_p5 = scmp.ge.s32.totalorder %s18_s23, 4   ;;  %s1475_s19 = smov %s1051_s20 }
 0x234   : > { %s1476_s20 = smov %s1153_s6  ;;  %s1477_s21 = smov %s1059_s22 }
 0x235   : > { %s1478_s22 = smov %s1480_s26  ;;  %17 = sbr.rel (!%p15_p5) target bundleno = 4 (0x4), region = 75 }
 0x23c   :  { %783 = vsyncpa [#allocation3], 1 }
 0x23d   :  { %785 = vsyncpa [#allocation3 + $0x1], 1 }

// kernel: tpu_custom_call.1
= control target key start
LH: loop header
LB: loop body
LE: loop exit
PB: predicated region body
PF: predicated region fallthrough
CT: control target
= control target key end

     0   :  { %10 = vsyncpa [#allocation3], 0  ;;  %s1466_s0 = inlined_call_operand.vmem [shape: f32[2,32,256], index: 0, kind: input, shape index: {}]   ;;  %s1467_s1 = inlined_call_operand.vmem [shape: f32[64,32], index: 1, kind: input, shape index: {}]   ;;  %s1468_s2 = inlined_call_operand.vmem [shape: f32[64,1], index: 2, kind: input, shape index: {}]   ;;  %s1469_s3 = inlined_call_operand.vmem [shape: f32[32,64], index: 3, kind: input, shape index: {}]   ;;  %s1470_s4 = inlined_call_operand.vmem [shape: f32[32,1], index: 4, kind: input, shape index: {}]   ;;  %s1471_s5 = inlined_call_operand.hbm [shape: f32[2,32,256], index: 5, kind: output, shape index: {}]  }
   0x1   :  { %12 = vsyncpa [#allocation3 + $0x1], 0  ;;  %s1100_s18 = smov 0   ;;  %s1102_s19 = smov 0  }
   0x2   :  { %s1104_s20 = smov 0   ;;  %s1106_s21 = smov 0  }
   0x3   :  { %s1108_s22 = smov 0   ;;  %s1110_s23 = smov 0  }
   0x4 LB: > { %s841_s24 = sadd.s32 4294967295, %s1063_s23   ;;  %s842_s25 = sadd.s32 4294967294, %s1063_s23   ;;  %s1063_s23 = sphi %s1110_s23, %s18_s23   ;;  %s1059_s22 = sphi %s1108_s22, %s1478_s22   ;;  %s1055_s21 = sphi %s1106_s21, %s1477_s21   ;;  %s1051_s20 = sphi %s1104_s20, %s1476_s20   ;;  %s1047_s19 = sphi %s1102_s19, %s1475_s19   ;;  %s1043_s18 = sphi %s1100_s18, %s1474_s18  }
   0x5   : > { %s30_s26 = sadd.s32 1, %s1059_s22  ;;  %s151_s27 = sadd.s32 1, %s1051_s20 }
   0x6   : > { %p32_p0 = scmp.ge.s32.totalorder %s30_s26, 2  ;;  %p161_p1 = scmp.ne.s32.totalorder %s1051_s20, %s1047_s19 }
   0x7   : > { %p162_p2 = scmp.eq.s32.totalorder %s841_s24, 1  ;;  %p167_p3 = scmp.ne.s32.totalorder %s1047_s19, %s1043_s18 }
   0x8   : > { %s1480_s26 = smov (%p32_p0, %s30_s26), 0  ;;  %p168_p5 = scmp.eq.s32.totalorder %s842_s25, 1 }
   0x9   : > { %p1140_p4 = por %p162_p2, %p161_p1  ;;  %s146_s29 = ssub.s32 %s1059_s22, %s1480_s26 }
   0xa   : > { %p845_p6 = scmp.ge.s32.totalorder %s1063_s23, 1  ;;  %p149_p7 = scmp.eq.s32.totalorder %s146_s29, 0 }
   0xb   : > { %p1147_p8 = por %p168_p5, %p167_p3  ;;  %p211_p9 = scmp.lt.s32.totalorder %s1063_s23, 3 }
   0xc   : > { %s1153_s6 = scalar_select %p149_p7, %s1051_s20, %s151_s27  }
   0xd   : > { %p212_p10 = pnand %p845_p6, %p211_p9 }
   0xe   : > { %p244_p11 = scmp.lt.s32.totalorder (!%p212_p10), %s1055_s21, 1  ;;  %v1065_v0 = vmov (!%p212_p10), 0.0   ;;  %v1066_v1 = vmov (!%p212_p10), 0   ;;  %v262_v2 = vld [vmem:[%s1468_s2] sm:$0xff] (!%p212_p10)  ;;  %v264_v3 = vld [vmem:[%s1468_s2 + $0x10] sm:$0xff] (!%p212_p10)  ;;  %v263_v4 = vld [vmem:[%s1468_s2 + $0x8] sm:$0xff] (!%p212_p10) }
   0xf   : > { %215 = sbr.rel (%p212_p10) target bundleno = 557 (0x22d), region = 40  ;;  %415 = vmatprep.mubr.f32.mxu0 (!%p212_p10), %v1065_v0  ;;  %705 = vmatprep.mubr.f32.mxu1 (!%p212_p10), %v1065_v0  ;;  %v265_v5 = vld [vmem:[%s1468_s2 + $0x18] sm:$0xff] (!%p212_p10)  ;;  %v266_v17 = vld [vmem:[%s1468_s2 + $0x20] sm:$0xff] (!%p212_p10)  ;;  %v267_v18 = vld [vmem:[%s1468_s2 + $0x28] sm:$0xff] (!%p212_p10)  ;;  %vm326_vm0 = vcmask (!%p212_p10), 261120   ;;  %vm628_vm1 = vcmask (!%p212_p10), 523264  }
  0x10   : > { %951 = vset.pattern.permute.xlu0 (!%p212_p10), %v1066_v1  ;;  %952 = vset.pattern.permute.xlu1 (!%p212_p10), %v1066_v1  ;;  %v268_v20 = vld [vmem:[%s1468_s2 + $0x30] sm:$0xff] (!%p212_p10)  ;;  %v269_v21 = vld [vmem:[%s1468_s2 + $0x38] sm:$0xff] (!%p212_p10)  ;;  %v254_v22 = vld [vmem:[%s1467_s1] sm:$0xff] (!%p212_p10)  ;;  %s240_s15 = sand.u32 (!%p212_p10), 1, %s1047_s19   ;;  %s867_s24 = sshll.u32 (!%p212_p10), %s1055_s21, 10 }
  0x11   : > { %288 = vperm.xlu0 (!%p212_p10), %951, %v262_v2   ;;  %298 = vperm.xlu1 (!%p212_p10), %952, %v264_v3   ;;  %v274_v23 = vld [vmem:[%s1470_s4] sm:$0xff] (!%p212_p10)  ;;  %v275_v24 = vld [vmem:[%s1470_s4 + $0x8] sm:$0xff] (!%p212_p10)  ;;  %v276_v26 = vld [vmem:[%s1470_s4 + $0x10] sm:$0xff] (!%p212_p10)  ;;  %s846_s16 = sshll.u32 (!%p212_p10), %s240_s15, 6  ;;  %s1067_s9 = smov (!%p212_p10), [#allocation2]  }
  0x12   : > { %v255_v25 = vld [vmem:[%s1467_s1 + $0x8] sm:$0xff] (!%p212_p10)  ;;  %v277_v27 = vld [vmem:[%s1470_s4 + $0x18] sm:$0xff] (!%p212_p10)  ;;  %v256_v28 = vld [vmem:[%s1467_s1 + $0x10] sm:$0xff] (!%p212_p10)  ;;  %s989_s10 = sshll.u32 (!%p212_p10), %s1067_s9, 4  ;;  %s990_s10 = int_to_ptr.vmem [resolvable:$false] %s989_s10 }
  0x13   : > { %v257_v29 = vld [vmem:[%s1467_s1 + $0x18] sm:$0xff] (!%p212_p10)  ;;  %v258_v30 = vld [vmem:[%s1467_s1 + $0x20] sm:$0xff] (!%p212_p10)  ;;  %v259_v31 = vld [vmem:[%s1467_s1 + $0x28] sm:$0xff] (!%p212_p10)  ;;  %s991_s11 = scalar_lea.vmem (!%p212_p10), %s990_s10, 2048 }
  0x14   : > { %v260_v32 = vld [vmem:[%s1467_s1 + $0x30] sm:$0xff] (!%p212_p10)  ;;  %v261_v33 = vld [vmem:[%s1467_s1 + $0x38] sm:$0xff] (!%p212_p10) }
  0x15   : > { %293 = vperm.xlu0 (!%p212_p10), %951, %v263_v4   ;;  %303 = vperm.xlu1 (!%p212_p10), %952, %v265_v5  }
  0x16   : > { %s245_s7 = scalar_select %p244_p11, %s1055_s21, 1 }
  0x17   : > { %s1420_s21 = scalar_lea.sflag [#allocation3], %s240_s15 }
  0x18   : > { %s866_s12 = sshll.u32 %s245_s7, 6  ;;  %s1411_s7 = scalar_lea.hbm %s1471_s5, %s867_s24 }
  0x19   : > { %s251_s17 = scalar_lea.vmem %s1466_s0, %s866_s12  ;;  %308 = vperm.xlu0 %951, %v266_v17   ;;  %313 = vperm.xlu1 %952, %v267_v18  }
  0x1a   : > { %v1174_v6 = vld [vmem:[%s251_s17 + $0x8] sm:$0xff]  ;;  %v1176_v7 = vld [vmem:[%s251_s17 + $0x18] sm:$0xff]  ;;  %v1178_v8 = vld [vmem:[%s251_s17] sm:$0xff] }
  0x1b   : > { %v868_v9 = vpack.c.bf16 %v1176_v7, %v1174_v6  ;;  %v1182_v10 = vld [vmem:[%s251_s17 + $0x10] sm:$0xff]  ;;  %v1184_v11 = vld [vmem:[%s251_s17 + $0x28] sm:$0xff]  ;;  %v1186_v12 = vld [vmem:[%s251_s17 + $0x38] sm:$0xff] }
  0x1c   : > { %v870_v13 = vpack.c.bf16 %v1182_v10, %v1178_v8  ;;  %v872_v14 = vpack.c.bf16 %v1186_v12, %v1184_v11  ;;  %v1192_v15 = vld [vmem:[%s251_s17 + $0x20] sm:$0xff]  ;;  %v1194_v16 = vld [vmem:[%s251_s17 + $0x30] sm:$0xff]  ;;  %s1393_s17 = scalar_lea.vmem [#allocation2], %s846_s16 }
  0x1d   : > { %869 = vmatprep.subr.bf16.mxu0 %v868_v9  ;;  %v874_v19 = vpack.c.bf16 %v1194_v16, %v1192_v15  ;;  %318 = vperm.xlu0 %951, %v268_v20   ;;  %s762_s25 = sshll.u32 %s1393_s17, 4  ;;  %s1413_s25 = int_to_ptr.vmem [resolvable:$true] %s762_s25 }
  0x1e   : > { %871 = vmatpush1.bf16.msra.mxu0 %v870_v13  ;;  %323 = vperm.xlu1 %952, %v269_v21   ;;  %s985_s8 = scalar_lea.vmem %s1413_s25, 1024  ;;  %p992_p1 = scmp.lt.s32.totalorder %s1413_s25, %s990_s10 }
  0x1f   : > { %873 = vmatprep.subr.bf16.mxu0 %v872_v14  ;;  %p986_p12 = scmp.ne.s32.totalorder %s1413_s25, %s985_s8  ;;  %p993_p2 = scmp.lt.s32.totalorder %s991_s11, %s985_s8 }
  0x21   : > { %610 = vperm.xlu0 %951, %v274_v23   ;;  %p987_p13 = pnand %p986_p12, %p1140_p4  ;;  %p994_p3 = por %p993_p2, %p992_p1 }
  0x22   : > { %875 = vmatpush1.bf16.msra.mxu0 %v874_v19  ;;  %615 = vperm.xlu1 %952, %v275_v24  }
  0x23   : > { %p988_p0 = pneg %p987_p13 }
  0x25   : > { %849 = vmatmul.mubr.msk.f32.vlgmr.msra.gmra.mrb[0].mxu0 %vm326_vm0, %v254_v22  ;;  %620 = vperm.xlu0 %951, %v276_v26   ;;  %p995_p5 = pnand %p994_p3, %p988_p0 }
  0x26   : > { %421 = vmatprep.mubr.f32.mxu0 %v1065_v0  ;;  %625 = vperm.xlu1 %952, %v277_v27  }
  0x29   : > { %850 = vmatmul.mubr.msk.f32.gmra.mrb[2].mxu0 %vm326_vm0, %v255_v25 }
  0x2a   : > { %427 = vmatprep.mubr.f32.mxu0 %v1065_v0 }
  0x2d   : > { %851 = vmatmul.mubr.msk.f32.gmra.mrb[4].mxu0 %vm326_vm0, %v256_v28 }
  0x2e   : > { %433 = vmatprep.mubr.f32.mxu0 %v1065_v0 }
  0x31   : > { %852 = vmatmul.mubr.msk.f32.gmra.mrb[6].mxu0 %vm326_vm0, %v257_v29 }
  0x32   : > { %439 = vmatprep.mubr.f32.mxu0 %v1065_v0 }
  0x35   : > { %853 = vmatmul.mubr.msk.f32.gmra.mrb[8].mxu0 %vm326_vm0, %v258_v30 }
  0x36   : > { %445 = vmatprep.mubr.f32.mxu0 %v1065_v0 }
  0x39   : > { %854 = vmatmul.mubr.msk.f32.gmra.mrb[10].mxu0 %vm326_vm0, %v259_v31 }
  0x3a   : > { %451 = vmatprep.mubr.f32.mxu0 %v1065_v0 }
  0x3d   : > { %855 = vmatmul.mubr.msk.f32.gmra.mrb[12].mxu0 %vm326_vm0, %v260_v32 }
  0x3e   : > { %457 = vmatprep.mubr.f32.mxu0 %v1065_v0 }
  0x41   : > { %856 = vmatmul.mubr.msk.f32.gmra.mrb[14].mxu0 %vm326_vm0, %v261_v33 }
  0x90   : > { %v289_v34 = vpop.permute.xlu0 %288  ;;  %v299_v46 = vpop.permute.xlu1 %298 }
  0x94   : > { %v294_v40 = vpop.permute.xlu0 %293  ;;  %v304_v1 = vpop.permute.xlu1 %303 }
  0x98   : > { %v309_v24 = vpop.permute.xlu0 %308 }
  0xf8   : > { %v417_v35 = vpop.f32.mrb[0].mxu0 }
  0xf9   : > { %v1261_v36 = vadd.f32 %v417_v35, %v289_v34  ;;  %v419_v37 = vpop.f32.mrb[1].mxu0 }
  0xfa   : > { %v1263_v38 = vadd.f32 %v419_v37, %v289_v34 }
  0xfb   : > { %v464_v39 = vmul.f32 %v1261_v36, %v1261_v36 }
  0xfc   : > { %v465_v41 = vmul.f32 %v1263_v38, %v1263_v38  ;;  %v423_v42 = vpop.f32.mrb[2].mxu0 }
  0xfd   : > { %v480_v43 = vmul.f32 %v464_v39, %v1261_v36  ;;  %v1270_v44 = vadd.f32 %v423_v42, %v294_v40  ;;  %v425_v45 = vpop.f32.mrb[3].mxu0 }
  0xfe   : > { %v481_v47 = vmul.f32 %v465_v41, %v1263_v38  ;;  %v1273_v48 = vadd.f32 %v425_v45, %v294_v40  ;;  %v314_v41 = vpop.permute.xlu1 %313 }
  0xff   : > { %v496_v49 = vmul.f32 0.044715, %v480_v43  ;;  %v466_v50 = vmul.f32 %v1270_v44, %v1270_v44 }
 0x100   : > { %v497_v51 = vmul.f32 0.044715, %v481_v47  ;;  %v467_v52 = vmul.f32 %v1273_v48, %v1273_v48  ;;  %v429_v53 = vpop.f32.mrb[4].mxu0 }
 0x101   : > { %v512_v54 = vadd.f32 %v496_v49, %v1261_v36  ;;  %v482_v55 = vmul.f32 %v466_v50, %v1270_v44  ;;  %v1281_v56 = vadd.f32 %v429_v53, %v299_v46  ;;  %v431_v57 = vpop.f32.mrb[5].mxu0 }
 0x102   : > { %v483_v58 = vmul.f32 %v467_v52, %v1273_v48  ;;  %v1284_v59 = vadd.f32 %v431_v57, %v299_v46  ;;  %v513_v60 = vadd.f32 %v497_v51, %v1263_v38 }
 0x103   : > { %v528_v61 = vmul.f32 0.7978846, %v512_v54  ;;  %v498_v62 = vmul.f32 0.044715, %v482_v55  ;;  %v468_v63 = vmul.f32 %v1281_v56, %v1281_v56 }
 0x104   : > { %v499_v2 = vmul.f32 0.044715, %v483_v58  ;;  %v469_v3 = vmul.f32 %v1284_v59, %v1284_v59  ;;  %v435_v4 = vpop.f32.mrb[6].mxu0  ;;  %v529_v5 = vmul.f32 0.7978846, %v513_v60 }
 0x105   : > { %v514_v9 = vadd.f32 %v498_v62, %v1270_v44  ;;  %v484_v13 = vmul.f32 %v468_v63, %v1281_v56  ;;  %v1293_v14 = vadd.f32 %v435_v4, %v304_v1  ;;  %v437_v17 = vpop.f32.mrb[7].mxu0  ;;  %953 = vtanh.f32 %v528_v61  ;;  %v319_v62 = vpop.permute.xlu0 %318 }
 0x106   : > { %v485_v18 = vmul.f32 %v469_v3, %v1284_v59  ;;  %v1296_v19 = vadd.f32 %v437_v17, %v304_v1  ;;  %v515_v20 = vadd.f32 %v499_v2, %v1273_v48  ;;  %955 = vtanh.f32 %v529_v5 }
 0x107   : > { %v530_v21 = vmul.f32 0.7978846, %v514_v9  ;;  %v500_v22 = vmul.f32 0.044715, %v484_v13  ;;  %v470_v23 = vmul.f32 %v1293_v14, %v1293_v14 }
 0x108   : > { %v501_v25 = vmul.f32 0.044715, %v485_v18  ;;  %v471_v26 = vmul.f32 %v1296_v19, %v1296_v19  ;;  %v441_v27 = vpop.f32.mrb[8].mxu0  ;;  %v531_v28 = vmul.f32 0.7978846, %v515_v20 }
 0x109   : > { %v516_v29 = vadd.f32 %v500_v22, %v1281_v56  ;;  %v486_v30 = vmul.f32 %v470_v23, %v1293_v14  ;;  %v1305_v31 = vadd.f32 %v441_v27, %v309_v24  ;;  %v443_v32 = vpop.f32.mrb[9].mxu0  ;;  %957 = vtanh.f32 %v530_v21 }
 0x10a   : > { %v517_v33 = vadd.f32 %v501_v25, %v1284_v59  ;;  %v487_v34 = vmul.f32 %v471_v26, %v1296_v19  ;;  %v1309_v35 = vadd.f32 %v443_v32, %v309_v24  ;;  %959 = vtanh.f32 %v531_v28  ;;  %v324_v28 = vpop.permute.xlu1 %323 }
 0x10b   : > { %v532_v37 = vmul.f32 0.7978846, %v516_v29  ;;  %v502_v39 = vmul.f32 0.044715, %v486_v30  ;;  %v472_v40 = vmul.f32 %v1305_v31, %v1305_v31 }
 0x10c   : > { %v533_v42 = vmul.f32 0.7978846, %v517_v33  ;;  %v503_v43 = vmul.f32 0.044715, %v487_v34  ;;  %v473_v45 = vmul.f32 %v1309_v35, %v1309_v35  ;;  %v447_v46 = vpop.f32.mrb[10].mxu0 }
 0x10d   : > { %v518_v47 = vadd.f32 %v502_v39, %v1293_v14  ;;  %v488_v49 = vmul.f32 %v472_v40, %v1305_v31  ;;  %v1317_v50 = vadd.f32 %v447_v46, %v314_v41  ;;  %v449_v51 = vpop.f32.mrb[11].mxu0  ;;  %961 = vtanh.f32 %v532_v37 }
 0x10e   : > { %v519_v52 = vadd.f32 %v503_v43, %v1296_v19  ;;  %v489_v53 = vmul.f32 %v473_v45, %v1309_v35  ;;  %v1321_v54 = vadd.f32 %v449_v51, %v314_v41  ;;  %963 = vtanh.f32 %v533_v42 }
 0x10f   : > { %v954_v55 = vpop.eup %953  ;;  %v534_v57 = vmul.f32 0.7978846, %v518_v47  ;;  %v504_v58 = vmul.f32 0.044715, %v488_v49  ;;  %v474_v60 = vmul.f32 %v1317_v50, %v1317_v50 }
 0x110   : > { %v956_v61 = vpop.eup %955  ;;  %v535_v63 = vmul.f32 0.7978846, %v519_v52  ;;  %v505_v1 = vmul.f32 0.044715, %v489_v53  ;;  %v475_v2 = vmul.f32 %v1321_v54, %v1321_v54  ;;  %v453_v3 = vpop.f32.mrb[12].mxu0  ;;  %v560_v4 = vadd.f32 1.0, %v954_v55 }
 0x111   : > { %965 = vtanh.f32 %v534_v57  ;;  %v520_v5 = vadd.f32 %v504_v58, %v1305_v31  ;;  %v490_v9 = vmul.f32 %v474_v60, %v1317_v50  ;;  %v1329_v13 = vadd.f32 %v453_v3, %v319_v62  ;;  %v455_v17 = vpop.f32.mrb[13].mxu0 }
 0x112   : > { %967 = vtanh.f32 %v535_v63  ;;  %v521_v18 = vadd.f32 %v505_v1, %v1309_v35  ;;  %v491_v20 = vmul.f32 %v475_v2, %v1321_v54  ;;  %v1333_v21 = vadd.f32 %v455_v17, %v319_v62 }
 0x113   : > { %v958_v22 = vpop.eup %957  ;;  %v536_v23 = vmul.f32 0.7978846, %v520_v5  ;;  %v506_v24 = vmul.f32 0.044715, %v490_v9  ;;  %v476_v25 = vmul.f32 %v1329_v13, %v1329_v13  ;;  %v561_v26 = vadd.f32 1.0, %v956_v61 }
 0x114   : > { %v960_v27 = vpop.eup %959  ;;  %v537_v29 = vmul.f32 0.7978846, %v521_v18  ;;  %v507_v30 = vmul.f32 0.044715, %v491_v20  ;;  %v477_v32 = vmul.f32 %v1333_v21, %v1333_v21  ;;  %v459_v33 = vpop.f32.mrb[14].mxu0  ;;  %v562_v34 = vadd.f32 1.0, %v958_v22 }
 0x115   : > { %969 = vtanh.f32 %v536_v23  ;;  %v522_v37 = vadd.f32 %v506_v24, %v1317_v50  ;;  %v492_v39 = vmul.f32 %v476_v25, %v1329_v13  ;;  %v1341_v40 = vadd.f32 %v459_v33, %v324_v28  ;;  %v461_v41 = vpop.f32.mrb[15].mxu0 }
 0x116   : > { %971 = vtanh.f32 %v537_v29  ;;  %v523_v42 = vadd.f32 %v507_v30, %v1321_v54  ;;  %v493_v43 = vmul.f32 %v477_v32, %v1333_v21  ;;  %v1345_v45 = vadd.f32 %v461_v41, %v324_v28 }
 0x117   : > { %v538_v46 = vmul.f32 0.7978846, %v522_v37  ;;  %v508_v47 = vmul.f32 0.044715, %v492_v39  ;;  %v478_v49 = vmul.f32 %v1341_v40, %v1341_v40  ;;  %v563_v51 = vadd.f32 1.0, %v960_v27  ;;  %v962_v52 = vpop.eup %961 }
 0x118   : > { %v539_v53 = vmul.f32 0.7978846, %v523_v42  ;;  %v509_v55 = vmul.f32 0.044715, %v493_v43  ;;  %v479_v57 = vmul.f32 %v1345_v45, %v1345_v45  ;;  %v577_v58 = vmul.f32 0.5, %v561_v26  ;;  %v964_v60 = vpop.eup %963 }
 0x119   : > { %973 = vtanh.f32 %v538_v46  ;;  %v524_v61 = vadd.f32 %v508_v47, %v1329_v13  ;;  %v494_v62 = vmul.f32 %v478_v49, %v1341_v40  ;;  %v579_v63 = vmul.f32 0.5, %v563_v51 }
 0x11a   : > { %975 = vtanh.f32 %v539_v53  ;;  %v525_v1 = vadd.f32 %v509_v55, %v1333_v21  ;;  %v495_v2 = vmul.f32 %v479_v57, %v1345_v45  ;;  %v593_v3 = vmul.f32 %v577_v58, %v1263_v38 }
 0x11b   : > { %v966_v5 = vpop.eup %965  ;;  %v540_v9 = vmul.f32 0.7978846, %v524_v61  ;;  %v510_v17 = vmul.f32 0.044715, %v494_v62  ;;  %v595_v18 = vmul.f32 %v579_v63, %v1273_v48  ;;  %v576_v20 = vmul.f32 0.5, %v560_v4 }
 0x11c   : > { %v968_v22 = vpop.eup %967  ;;  %v541_v23 = vmul.f32 0.7978846, %v525_v1  ;;  %v511_v24 = vmul.f32 0.044715, %v495_v2  ;;  %v578_v25 = vmul.f32 0.5, %v562_v34  ;;  %v565_v26 = vadd.f32 1.0, %v964_v60 }
 0x11d   : > { %977 = vtanh.f32 %v540_v9  ;;  %v526_v27 = vadd.f32 %v510_v17, %v1341_v40  ;;  %v876_v28 = vpack.c.bf16 %v595_v18, %v593_v3  ;;  %v592_v29 = vmul.f32 %v576_v20, %v1261_v36 }
 0x11e   : > { %979 = vtanh.f32 %v541_v23  ;;  %v527_v38 = vadd.f32 %v511_v24, %v1345_v45  ;;  %v594_v30 = vmul.f32 %v578_v25, %v1270_v44  ;;  %v567_v32 = vadd.f32 1.0, %v968_v22 }
 0x11f   : > { %v970_v33 = vpop.eup %969  ;;  %v542_v48 = vmul.f32 0.7978846, %v526_v27  ;;  %877 = vmatprep.subr.bf16.mxu1 %v876_v28  ;;  %v581_v4 = vmul.f32 0.5, %v565_v26  ;;  %v564_v37 = vadd.f32 1.0, %v962_v52  ;;  %v566_v39 = vadd.f32 1.0, %v966_v5 }
 0x120   : > { %v972_v34 = vpop.eup %971  ;;  %v543_v41 = vmul.f32 0.7978846, %v527_v38  ;;  %v878_v42 = vpack.c.bf16 %v594_v30, %v592_v29  ;;  %v583_v43 = vmul.f32 0.5, %v567_v32  ;;  %v568_v46 = vadd.f32 1.0, %v970_v33  ;;  %v270_v33 = vld [vmem:[%s1469_s3] sm:$0xff] }
 0x121   : > { %981 = vtanh.f32 %v542_v48  ;;  %v580_v47 = vmul.f32 0.5, %v564_v37  ;;  %v582_v36 = vmul.f32 0.5, %v566_v39  ;;  %v597_v49 = vmul.f32 %v581_v4, %v1284_v59 }
 0x122   : > { %983 = vtanh.f32 %v543_v41  ;;  %879 = vmatpush1.bf16.msra.mxu1 %v878_v42  ;;  %v599_v44 = vmul.f32 %v583_v43, %v1296_v19  ;;  %v569_v51 = vadd.f32 1.0, %v972_v34  ;;  %v584_v61 = vmul.f32 0.5, %v568_v46  ;;  %v616_v41 = vpop.permute.xlu1 %615 }
 0x123   : > { %v974_v53 = vpop.eup %973  ;;  %v596_v55 = vmul.f32 %v580_v47, %v1281_v56  ;;  %v598_v52 = vmul.f32 %v582_v36, %v1293_v14 }
 0x124   : > { %v976_v57 = vpop.eup %975  ;;  %v880_v58 = vpack.c.bf16 %v599_v44, %v597_v49  ;;  %v570_v60 = vadd.f32 1.0, %v974_v53  ;;  %v585_v1 = vmul.f32 0.5, %v569_v51  ;;  %v600_v19 = vmul.f32 %v584_v61, %v1305_v31 }
 0x125   : > { %v882_v62 = vpack.c.bf16 %v598_v52, %v596_v55  ;;  %v571_v63 = vadd.f32 1.0, %v976_v57 }
 0x126   : > { %881 = vmatprep.subr.bf16.mxu1 %v880_v58  ;;  %v586_v2 = vmul.f32 0.5, %v570_v60  ;;  %v601_v14 = vmul.f32 %v585_v1, %v1309_v35  ;;  %v626_v52 = vpop.permute.xlu1 %625 }
 0x127   : > { %v978_v3 = vpop.eup %977  ;;  %883 = vmatpush1.bf16.msra.mxu1 %v882_v62  ;;  %v587_v59 = vmul.f32 0.5, %v571_v63 }
 0x128   : > { %v980_v5 = vpop.eup %979  ;;  %v602_v9 = vmul.f32 %v586_v2, %v1317_v50  ;;  %v572_v56 = vadd.f32 1.0, %v978_v3 }
 0x129   : > { %v603_v17 = vmul.f32 %v587_v59, %v1321_v54  ;;  %v573_v18 = vadd.f32 1.0, %v980_v5 }
 0x12a   : > { %v886_v20 = vpack.c.bf16 %v602_v9, %v600_v19  ;;  %v588_v26 = vmul.f32 0.5, %v572_v56 }
 0x12b   : > { %v982_v22 = vpop.eup %981  ;;  %v884_v23 = vpack.c.bf16 %v603_v17, %v601_v14  ;;  %v589_v28 = vmul.f32 0.5, %v573_v18 }
 0x12c   : > { %v984_v24 = vpop.eup %983  ;;  %v574_v25 = vadd.f32 1.0, %v982_v22  ;;  %v604_v50 = vmul.f32 %v588_v26, %v1329_v13  ;;  %v271_v13 = vld [vmem:[%s1469_s3 + $0x8] sm:$0xff] }
 0x12d   : > { %885 = vmatprep.subr.bf16.mxu1 %v884_v23  ;;  %v575_v27 = vadd.f32 1.0, %v984_v24  ;;  %v605_v35 = vmul.f32 %v589_v28, %v1333_v21  ;;  %v272_v21 = vld [vmem:[%s1469_s3 + $0x10] sm:$0xff] }
 0x12e   : > { %887 = vmatpush1.bf16.msra.mxu1 %v886_v20  ;;  %v590_v29 = vmul.f32 0.5, %v574_v25 }
 0x12f   : > { %v591_v31 = vmul.f32 0.5, %v575_v27 }
 0x130   : > { %v606_v38 = vmul.f32 %v590_v29, %v1341_v40  ;;  %v273_v40 = vld [vmem:[%s1469_s3 + $0x18] sm:$0xff] }
 0x131   : > { %v607_v54 = vmul.f32 %v591_v31, %v1345_v45  ;;  %v611_v45 = vpop.permute.xlu0 %610 }
 0x132   : > { %v890_v30 = vpack.c.bf16 %v606_v38, %v604_v50 }
 0x133   : > { %v888_v32 = vpack.c.bf16 %v607_v54, %v605_v35 }
 0x135   : > { %889 = vmatprep.subr.bf16.mxu1 %v888_v32  ;;  %v621_v36 = vpop.permute.xlu0 %620 }
 0x136   : > { %891 = vmatpush1.bf16.msra.mxu1 %v890_v30 }
 0x139   : > { %857 = vmatmul.mubr.msk.f32.vlgmr.msra.gmra.mrb[0].mxu1 %vm628_vm1, %v270_v33 }
 0x13a   : > { %711 = vmatprep.mubr.f32.mxu1 %v1065_v0 }
 0x13d   : > { %858 = vmatmul.mubr.msk.f32.gmra.mrb[2].mxu1 %vm628_vm1, %v271_v13 }
 0x13e   : > { %717 = vmatprep.mubr.f32.mxu1 %v1065_v0 }
 0x141   : > { %859 = vmatmul.mubr.msk.f32.gmra.mrb[4].mxu1 %vm628_vm1, %v272_v21 }
 0x142   : > { %723 = vmatprep.mubr.f32.mxu1 %v1065_v0 }
 0x145   : > { %860 = vmatmul.mubr.msk.f32.gmra.mrb[6].mxu1 %vm628_vm1, %v273_v40 }
 0x20c   : > { %v707_v48 = vpop.f32.mrb[0].mxu1 }
 0x20d   : > { %v708_v4 = vadd.f32 %v707_v48, %v611_v45  ;;  %v709_v37 = vpop.f32.mrb[1].mxu1 }
 0x20e   : > { %v710_v39 = vadd.f32 %v709_v37, %v611_v45 }
 0x20f   : > { %v730_v34 = vadd.f32 %v708_v4, %v1178_v8 }
 0x210   : > { %v731_v42 = vadd.f32 %v710_v39, %v1174_v6  ;;  %v713_v43 = vpop.f32.mrb[2].mxu1 }
 0x211   : > { %738 = vst [vmem:[%s1393_s17] sm:$0xff] %v730_v34  ;;  %v714_v0 = vadd.f32 %v713_v43, %v616_v41  ;;  %v715_v46 = vpop.f32.mrb[3].mxu1 }
 0x212   : > { %739 = vst [vmem:[%s1393_s17 + $0x8] sm:$0xff] %v731_v42  ;;  %v716_v47 = vadd.f32 %v715_v46, %v616_v41 }
 0x213   : > { %v732_v8 = vadd.f32 %v714_v0, %v1182_v10 }
 0x214   : > { %v733_v6 = vadd.f32 %v716_v47, %v1176_v7  ;;  %v719_v49 = vpop.f32.mrb[4].mxu1 }
 0x215   : > { %740 = vst [vmem:[%s1393_s17 + $0x10] sm:$0xff] %v732_v8  ;;  %v720_v44 = vadd.f32 %v719_v49, %v621_v36  ;;  %v721_v51 = vpop.f32.mrb[5].mxu1 }
 0x216   : > { %741 = vst [vmem:[%s1393_s17 + $0x18] sm:$0xff] %v733_v6  ;;  %v722_v53 = vadd.f32 %v721_v51, %v621_v36 }
 0x217   : > { %v734_v55 = vadd.f32 %v720_v44, %v1192_v15 }
 0x218   : > { %v735_v57 = vadd.f32 %v722_v53, %v1184_v11  ;;  %v725_v58 = vpop.f32.mrb[6].mxu1 }
 0x219   : > { %742 = vst [vmem:[%s1393_s17 + $0x20] sm:$0xff] %v734_v55  ;;  %v726_v7 = vadd.f32 %v725_v58, %v626_v52  ;;  %v727_v10 = vpop.f32.mrb[7].mxu1 }
 0x21a   : > { %743 = vst [vmem:[%s1393_s17 + $0x28] sm:$0xff] %v735_v57  ;;  %v728_v60 = vadd.f32 %v727_v10, %v626_v52 }
 0x21b   : > { %v736_v61 = vadd.f32 %v726_v7, %v1194_v16 }
 0x21c   : > { %v737_v11 = vadd.f32 %v728_v60, %v1186_v12 }
 0x21d   : > { %744 = vst [vmem:[%s1393_s17 + $0x30] sm:$0xff] %v736_v61 }
 0x21e   : > { %745 = vst [vmem:[%s1393_s17 + $0x38] sm:$0xff] %v737_v11 }
 0x21f   : > { %998 = shalt.err (!%p995_p5)
}
 0x220   : > { %s999_s12 = scalar_lea.hbm %s1411_s7, 1024  ;;  %s1003_s15 = scalar_lea.hbm %s1471_s5, 2048 }
 0x221   : > { %p1000_p6 = scmp.ne.s32.totalorder %s1411_s7, %s999_s12  ;;  %p1004_p10 = scmp.lt.u32.totalorder %s1411_s7, %s1471_s5 }
 0x222   : > { %p1005_p11 = scmp.lt.u32.totalorder %s1003_s15, %s999_s12  ;;  %p1007_p13 = scmp.lt.u32.totalorder %s999_s12, %s1411_s7 }
 0x223   : > { %p1001_p7 = pnand %p1000_p6, %p1140_p4 }
 0x224   : > { %p1006_p12 = por %p1005_p11, %p1004_p10 }
 0x225   : > { %p1002_p9 = pneg %p1001_p7 }
 0x226   : > { %p1008_p0 = por %p1007_p13, %p1006_p12 }
 0x228   : > { %p1009_p1 = pnand %p1008_p0, %p1002_p9 }
 0x22a   : > { %1012 = shalt.err (!%p1009_p1)
}
 0x22b   : > { %s1068_s24 = smov 256   ;;  %s1069_s27 = smov 16  }
 0x22c   : > { %892 = dma.vmem_to_hbm [thread:$0]  (%p1140_p4), %s1413_s25, 1024, %s1411_s7, %s1420_s21, %s1068_s24, %s1068_s24, %s1069_s27  }
 0x22d PF: > { %p898_p2 = scmp.ge.s32.totalorder %s1063_s23, 2  ;;  %s777_s29 = sand.u32 1, %s1043_s18  }
 0x22e   : > { %s778_s8 = scalar_lea.sflag [#allocation3], %s777_s29 }
 0x22f   : > { %p895_p3 = pnand %p898_p2, %p1147_p8 }
 0x231   : > { %1038 = dma.done.wait (!%p895_p3), %s778_s8, 1024  }
 0x232   : > { %1040 = vsyncadd (!%p895_p3), %s778_s8, 4294966272  ;;  %s18_s23 = sadd.s32 1, %s1063_s23   ;;  %s1474_s18 = smov %s1047_s19 }
 0x233   : > { %p15_p5 = scmp.ge.s32.totalorder %s18_s23, 4   ;;  %s1475_s19 = smov %s1051_s20 }
 0x234   : > { %s1476_s20 = smov %s1153_s6  ;;  %s1477_s21 = smov %s1059_s22 }
 0x235   : > { %s1478_s22 = smov %s1480_s26  ;;  %17 = sbr.rel (!%p15_p5) target bundleno = 4 (0x4), region = 75 }
 0x23c   :  { %783 = vsyncpa [#allocation3], 1 }
 0x23d   :  { %785 = vsyncpa [#allocation3 + $0x1], 1 }

</bundles_post_ra>
